<compile_context>
chip_gen: v6e
topology: v6e:2x2x1
jax: 0.10.0
libtpu: 0.0.40
codegen_flags: <defaults>
</compile_context>

<pallas_src>
import functools

import jax
import jax.numpy as jnp
import numpy as np
from jax.experimental import pallas as pl
from jax.experimental.pallas import tpu as pltpu

LANE = 128  # TPU lane width


def _round_up(n, m):
    return ((n + m - 1) // m) * m


# ----------------------------- in-kernel helpers -----------------------------

def _erf(x):
    # Abramowitz & Stegun 7.1.26 rational approximation, |err| < 1.5e-7 (~f32),
    # preserving the exact-erf nn.GELU() semantics; the exp() lands on the EUP.
    # TODO(synk): switch to jax.lax.erf once a Mosaic erf lowering is guaranteed.
    a1, a2, a3, a4, a5 = 0.254829592, -0.284496736, 1.421413741, -1.453152027, 1.061405429
    p = 0.3275911
    sgn = jnp.where(x >= 0.0, 1.0, -1.0)
    ax = jnp.abs(x)
    t = 1.0 / (1.0 + p * ax)
    poly = ((((a5 * t + a4) * t + a3) * t + a2) * t + a1) * t
    return sgn * (1.0 - poly * jnp.exp(-ax * ax))


def _gelu_exact(x):
    return x * 0.5 * (1.0 + _erf(x * 0.7071067811865476))


def _layernorm_masked(x, g, b, lane_valid, inv_n, eps):
    # Padded lanes of x are exactly 0, so the plain lane-sum gives the true mean;
    # the variance must mask out the (0 - mu) contributions of padded lanes.
    mu = jnp.sum(x, axis=-1, keepdims=True) * inv_n
    d = x - mu
    var = jnp.sum(d * d * lane_valid, axis=-1, keepdims=True) * inv_n
    # g/b are zero on padded lanes, so padded output lanes stay exactly 0.
    return d * jax.lax.rsqrt(var + eps) * g + b


# --------------------------------- kernel ------------------------------------

def encoder_layer_kernel(
    x_ref, hsel_ref,
    wqkv_ref, bqkv_ref, wo_ref, bo_ref,
    g1_ref, b1_ref, wi_ref, bi_ref, wd_ref, bd_ref, g2_ref, b2_ref,
    o_ref,
    *, bb, seq, hidden, num_heads, eps,
):
    Hp = x_ref.shape[-1]
    rows = bb * seq
    G = bb * num_heads
    inv_h = 1.0 / hidden

    x = x_ref[...]                       # (rows, Hp) lane-dense slab
    hsel = hsel_ref[...]                 # (num_heads, 1, Hp) per-head lane selector

    # Valid-lane mask for LayerNorm stats, derived from hsel (single source of truth
    # for the zero-padding invariant; no per-step iota/compare filler).
    lane_valid = jnp.sum(hsel, axis=0)   # (1, Hp): 1.0 on the real H lanes, 0.0 on pads

    # --- fused QKV projection (1/sqrt(head_dim) pre-folded into the q block) ---
    qkv = jnp.dot(x, wqkv_ref[...], preferred_element_type=jnp.float32) + bqkv_ref[...]
    q = qkv[:, 0 * Hp:1 * Hp]            # aligned, full-width 128-lane column blocks
    k = qkv[:, 1 * Hp:2 * Hp]
    v = qkv[:, 2 * Hp:3 * Hp]

    # --- multi-head attention, one dot_general pair batched over (bb * num_heads) ---
    # hsel[h] zeroes every lane outside head h's head_dim slice, so a full-width (Hp)
    # contraction equals the per-head contraction, and per-head context vectors land in
    # disjoint lanes -> summing over heads reassembles the (T, H) context directly.
    hsel4 = hsel.reshape(1, num_heads, 1, Hp)
    qh = (q.reshape(bb, 1, seq, Hp) * hsel4).reshape(G, seq, Hp)
    vh = (v.reshape(bb, 1, seq, Hp) * hsel4).reshape(G, seq, Hp)
    kh = jnp.broadcast_to(k.reshape(bb, 1, seq, Hp),
                          (bb, num_heads, seq, Hp)).reshape(G, seq, Hp)

    s = jax.lax.dot_general(             # (G, seq, seq) == per-(batch,head) q @ k.T
        qh, kh, (((2,), (2,)), ((0,), (0,))),
        preferred_element_type=jnp.float32)
    s = s - jnp.max(s, axis=-1, keepdims=True)
    p = jnp.exp(s)
    denom = jnp.sum(p, axis=-1, keepdims=True)
    r = pl.reciprocal(denom, approx=True)      # EUP
    r = r * (2.0 - denom * r)                  # one Newton step -> ~f32 accuracy
    p = p * r

    ctx = jax.lax.dot_general(           # (G, seq, Hp) == per-(batch,head) probs @ v
        p, vh, (((2,), (1,)), ((0,), (0,))),
        preferred_element_type=jnp.float32)
    attn = jnp.sum(ctx.reshape(bb, num_heads, seq, Hp), axis=1)   # heads: disjoint lanes
    attn = attn.reshape(rows, Hp)

    attn = jnp.dot(attn, wo_ref[...], preferred_element_type=jnp.float32) + bo_ref[...]

    # --- residual + LayerNorm ---
    h1 = _layernorm_masked(x + attn, g1_ref[...], b1_ref[...], lane_valid, inv_h, eps)

    # --- feed-forward: Linear -> exact GELU -> Linear ---
    ff = jnp.dot(h1, wi_ref[...], preferred_element_type=jnp.float32) + bi_ref[...]
    ff = _gelu_exact(ff)
    ff = jnp.dot(ff, wd_ref[...], preferred_element_type=jnp.float32) + bd_ref[...]

    # --- residual + final LayerNorm ---
    o_ref[...] = _layernorm_masked(h1 + ff, g2_ref[...], b2_ref[...], lane_valid, inv_h, eps)


# -------------------------------- wrapper -------------------------------------

def encoder_layer(x, params, *, num_heads, eps, batch_block=None):
    """x: (B, T, H) float32.  params: 16 arrays, (in, out) weight layout."""
    (wq, bq, wk, bk, wv, bv, wo, bo, g1, b1, wi, bi, wd, bd, g2, b2) = params
    B, T, H = x.shape
    inter = wi.shape[1]
    head_dim = H // num_heads
    Hp = _round_up(H, LANE)
    Ip = _round_up(inter, LANE)

    # Fold 1/sqrt(head_dim) into the query projection (weight-side, trace-time).
    scaling = head_dim ** -0.5
    wq_s = wq * scaling
    bq_s = bq * scaling

    def pad2(a, r, c):
        return jnp.pad(a, ((0, r - a.shape[0]), (0, c - a.shape[1])))

    # Fused QKV weight/bias: each of q/k/v is padded to its own 128-lane block before
    # concatenation, so q = cols [0,Hp), k = [Hp,2Hp), v = [2Hp,3Hp) stay lane-aligned.
    wqkv = jnp.concatenate([pad2(wq_s, Hp, Hp), pad2(wk, Hp, Hp), pad2(wv, Hp, Hp)], axis=1)
    bqkv = jnp.concatenate([pad2(bq_s, 1, Hp), pad2(bk, 1, Hp), pad2(bv, 1, Hp)], axis=1)

    pparams = [
        wqkv, bqkv,
        pad2(wo, Hp, Hp), pad2(bo, 1, Hp),
        pad2(g1, 1, Hp), pad2(b1, 1, Hp),
        pad2(wi, Hp, Ip), pad2(bi, 1, Ip),
        pad2(wd, Ip, Hp), pad2(bd, 1, Hp),
        pad2(g2, 1, Hp), pad2(b2, 1, Hp),
    ]

    # Per-head lane-selector masks: hsel[h, 0, c] = 1 iff lane c belongs to head h.
    hsel_np = np.zeros((num_heads, 1, Hp), np.float32)
    for h in range(num_heads):
        hsel_np[h, 0, h * head_dim:(h + 1) * head_dim] = 1.0
    hsel = jnp.asarray(hsel_np)

    # Lane-dense I/O slab: fold B and T into one row dimension, pad H to 128 lanes.
    x2 = jnp.pad(x.reshape(B * T, H), ((0, 0), (0, Hp - H)))

    # Single grid step by default: at this size one (B*T, Hp) slab per step is strictly
    # better on single-TC v5e/v6e (and measured-likely on v7x too, where splitting an
    # 8x128 slab across 2 TCs cannot amortize the fixed per-step pipeline cost).
    # Override batch_block for v7x experiments once per-step slabs are >= ~128 rows.
    bb = B if batch_block is None else batch_block
    if B % bb != 0 or ((bb * T) % 8 != 0 and bb != B):
        bb = B  # fall back to a single full block (block dims equal full array dims)
    grid = (B // bb,)
    rows = bb * T

    kernel = functools.partial(
        encoder_layer_kernel, bb=bb, seq=T, hidden=H, num_heads=num_heads, eps=eps)

    def full_spec(a):
        nd = a.ndim
        return pl.BlockSpec(a.shape, lambda i, _nd=nd: (0,) * _nd)

    in_specs = ([pl.BlockSpec((rows, Hp), lambda i: (i, 0)), full_spec(hsel)]
                + [full_spec(p) for p in pparams])
    out_spec = pl.BlockSpec((rows, Hp), lambda i: (i, 0))

    # Advisory cost estimate (real, unpadded problem sizes).
    flops = (2 * B * T * H * (3 * H)                         # fused qkv projection
             + 2 * B * T * H * H                             # out projection
             + 2 * B * num_heads * T * T * head_dim * 2      # scores + context
             + 2 * B * T * H * inter * 2)                    # FFN
    transcendentals = (B * num_heads * T * T                 # softmax exp
                       + B * T * inter                       # gelu exp
                       + B * num_heads * T + 2 * B * T)      # rcp + rsqrt
    bytes_accessed = 4 * (2 * B * T * H
                          + sum(int(np.prod(p.shape)) for p in params))

    weight_bytes = 4 * sum(int(np.prod(p.shape)) for p in pparams)
    block_bytes = 4 * rows * Hp
    # Cap at 32 MiB so the same config also leaves headroom on v7x's 64 MiB VMEM.
    vmem_limit = int(min(32 * 1024 * 1024,
                         max(16 * 1024 * 1024, 4 * weight_bytes + 16 * block_bytes)))
    # TODO(synk): for realistic encoder sizes (H ~ 1024, FFN = 4H) hold weights in bf16,
    # K-tile the FFN over the intermediate dim, tile attention flash-style over KV
    # blocks, and single-buffer the constant weight BlockSpecs before scaling up.

    out = pl.pallas_call(
        kernel,
        out_shape=jax.ShapeDtypeStruct((B * T, Hp), jnp.float32),
        grid_spec=pltpu.PrefetchScalarGridSpec(
            num_scalar_prefetch=0,
            grid=grid,
            in_specs=in_specs,
            out_specs=out_spec,
        ),
        compiler_params=pltpu.CompilerParams(
            dimension_semantics=(("parallel",) if grid[0] > 1 else ("arbitrary",)),
            vmem_limit_bytes=vmem_limit,
        ),
        cost_estimate=pl.CostEstimate(
            flops=flops, transcendentals=transcendentals,
            bytes_accessed=bytes_accessed),
    )(x2, hsel, *pparams)

    return out[:, :H].reshape(B, T, H)


# --------------------------- reference (pure JAX) ------------------------------

def encoder_layer_ref(x, params, *, num_heads, eps):
    (wq, bq, wk, bk, wv, bv, wo, bo, g1, b1, wi, bi, wd, bd, g2, b2) = params
    B, T, H = x.shape
    hd = H // num_heads

    q = (x @ wq + bq) * (hd ** -0.5)
    k = x @ wk + bk
    v = x @ wv + bv

    def split(t):
        return t.reshape(B, T, num_heads, hd).transpose(0, 2, 1, 3)

    qh, kh, vh = split(q), split(k), split(v)
    s = jnp.einsum("bhqd,bhkd->bhqk", qh, kh)
    p = jax.nn.softmax(s, axis=-1)
    o = jnp.einsum("bhqk,bhkd->bhqd", p, vh).transpose(0, 2, 1, 3).reshape(B, T, H)
    o = o @ wo + bo

    def ln(t, g, b):
        mu = t.mean(-1, keepdims=True)
        var = ((t - mu) ** 2).mean(-1, keepdims=True)
        return (t - mu) / jnp.sqrt(var + eps) * g + b

    h1 = ln(x + o, g1, b1)
    ff = jax.nn.gelu(h1 @ wi + bi, approximate=False)  # exact erf GELU
    ff = ff @ wd + bd
    return ln(h1 + ff, g2, b2)


# ------------------------------ param init ------------------------------------

def _init_params(key, hidden, intermediate):
    ks = jax.random.split(key, 8)
    s = 0.05

    def lin(k, din, dout):
        kw, kb = jax.random.split(k)
        w = jax.random.normal(kw, (din, dout), jnp.float32) * s   # (in, out) layout
        b = jax.random.normal(kb, (1, dout), jnp.float32) * s
        return w, b

    wq, bq = lin(ks[0], hidden, hidden)
    wk, bk = lin(ks[1], hidden, hidden)
    wv, bv = lin(ks[2], hidden, hidden)
    wo, bo = lin(ks[3], hidden, hidden)
    wi, bi = lin(ks[4], hidden, intermediate)
    wd, bd = lin(ks[5], intermediate, hidden)
    g1 = jnp.ones((1, hidden), jnp.float32) + 0.1 * jax.random.normal(ks[6], (1, hidden), jnp.float32)
    b1 = 0.1 * jax.random.normal(jax.random.fold_in(ks[6], 1), (1, hidden), jnp.float32)
    g2 = jnp.ones((1, hidden), jnp.float32) + 0.1 * jax.random.normal(ks[7], (1, hidden), jnp.float32)
    b2 = 0.1 * jax.random.normal(jax.random.fold_in(ks[7], 1), (1, hidden), jnp.float32)
    return [wq, bq, wk, bk, wv, bv, wo, bo, g1, b1, wi, bi, wd, bd, g2, b2]


# ---------------------------------- main ---------------------------------------

if __name__ == "__main__":
    config = dict(
        hidden_size=32,
        num_attention_heads=4,
        intermediate_size=64,
        layer_norm_eps=1e-5,
        hidden_dropout=0.0,
        attention_dropout=0.0,
        activation_dropout=0.0,
    )
    B, T, H = 2, 8, config["hidden_size"]

    key = jax.random.PRNGKey(0)
    kx, kp = jax.random.split(key)
    x = jax.random.normal(kx, (B, T, H), jnp.float32)
    params = _init_params(kp, config["hidden_size"], config["intermediate_size"])

    # TODO(synk): attention_mask / layer_head_mask / output_attentions paths
    # (all optional & None/False in this forward) are not wired into the kernel.

    out = encoder_layer(
        x, params,
        num_heads=config["num_attention_heads"],
        eps=config["layer_norm_eps"],
    )
    out = jax.block_until_ready(out)

    ref = encoder_layer_ref(
        x, params,
        num_heads=config["num_attention_heads"],
        eps=config["layer_norm_eps"],
    )
    assert out.shape == (B, T, H)
    err = float(jnp.max(jnp.abs(out - ref)))
    assert jnp.allclose(out, ref, atol=2e-4, rtol=2e-4), err

    print("KERNEL_OK")
</pallas_src>

<mosaic_0001>
module attributes {stable_mosaic.version = 11 : i64} {
  func.func @encoder_layer_kernel(%arg0: i32, %arg1: memref<16x128xf32, #tpu.memory_space<vmem>>, %arg2: memref<4x1x128xf32, #tpu.memory_space<vmem>>, %arg3: memref<128x384xf32, #tpu.memory_space<vmem>>, %arg4: memref<1x384xf32, #tpu.memory_space<vmem>>, %arg5: memref<128x128xf32, #tpu.memory_space<vmem>>, %arg6: memref<1x128xf32, #tpu.memory_space<vmem>>, %arg7: memref<1x128xf32, #tpu.memory_space<vmem>>, %arg8: memref<1x128xf32, #tpu.memory_space<vmem>>, %arg9: memref<128x128xf32, #tpu.memory_space<vmem>>, %arg10: memref<1x128xf32, #tpu.memory_space<vmem>>, %arg11: memref<128x128xf32, #tpu.memory_space<vmem>>, %arg12: memref<1x128xf32, #tpu.memory_space<vmem>>, %arg13: memref<1x128xf32, #tpu.memory_space<vmem>>, %arg14: memref<1x128xf32, #tpu.memory_space<vmem>>, %arg15: memref<16x128xf32, #tpu.memory_space<vmem>>) attributes {dimension_semantics = [#tpu.dimension_semantics<arbitrary>], iteration_bounds = array<i64: 1>, scalar_prefetch = 0 : i64, scratch_operands = 0 : i64, tpu.core_type = #tpu.core_type<tc>, window_params = [{transform_indices = @transform_0, window_bounds = array<i64: 16, 128>}, {pipeline_mode = #tpu.pipeline_mode<synchronous>, transform_indices = @transform_1, window_bounds = array<i64: 4, 1, 128>}, {pipeline_mode = #tpu.pipeline_mode<synchronous>, transform_indices = @transform_2, window_bounds = array<i64: 128, 384>}, {pipeline_mode = #tpu.pipeline_mode<synchronous>, transform_indices = @transform_3, window_bounds = array<i64: 1, 384>}, {pipeline_mode = #tpu.pipeline_mode<synchronous>, transform_indices = @transform_4, window_bounds = array<i64: 128, 128>}, {pipeline_mode = #tpu.pipeline_mode<synchronous>, transform_indices = @transform_5, window_bounds = array<i64: 1, 128>}, {pipeline_mode = #tpu.pipeline_mode<synchronous>, transform_indices = @transform_6, window_bounds = array<i64: 1, 128>}, {pipeline_mode = #tpu.pipeline_mode<synchronous>, transform_indices = @transform_7, window_bounds = array<i64: 1, 128>}, {pipeline_mode = #tpu.pipeline_mode<synchronous>, transform_indices = @transform_8, window_bounds = array<i64: 128, 128>}, {pipeline_mode = #tpu.pipeline_mode<synchronous>, transform_indices = @transform_9, window_bounds = array<i64: 1, 128>}, {pipeline_mode = #tpu.pipeline_mode<synchronous>, transform_indices = @transform_10, window_bounds = array<i64: 128, 128>}, {pipeline_mode = #tpu.pipeline_mode<synchronous>, transform_indices = @transform_11, window_bounds = array<i64: 1, 128>}, {pipeline_mode = #tpu.pipeline_mode<synchronous>, transform_indices = @transform_12, window_bounds = array<i64: 1, 128>}, {pipeline_mode = #tpu.pipeline_mode<synchronous>, transform_indices = @transform_13, window_bounds = array<i64: 1, 128>}, {transform_indices = @transform_14, window_bounds = array<i64: 16, 128>}]} {
    %c0 = arith.constant 0 : index
    %c0_0 = arith.constant 0 : index
    %0 = vector.load %arg1[%c0, %c0_0] : memref<16x128xf32, #tpu.memory_space<vmem>>, vector<16x128xf32>
    %c0_1 = arith.constant 0 : index
    %c0_2 = arith.constant 0 : index
    %c0_3 = arith.constant 0 : index
    %1 = vector.load %arg2[%c0_1, %c0_2, %c0_3] : memref<4x1x128xf32, #tpu.memory_space<vmem>>, vector<4x1x128xf32>
    %cst = arith.constant dense<0.000000e+00> : vector<1x128xf32>
    %2 = vector.multi_reduction <add>, %1, %cst [0] : vector<4x1x128xf32> to vector<1x128xf32>
    %c0_4 = arith.constant 0 : index
    %c0_5 = arith.constant 0 : index
    %3 = vector.load %arg3[%c0_4, %c0_5] : memref<128x384xf32, #tpu.memory_space<vmem>>, vector<128x384xf32>
    %cst_6 = arith.constant dense<0.000000e+00> : vector<16x384xf32>
    %4 = tpu.matmul %0, %3, %cst_6 {dimension_numbers = #tpu.dot_dimension_numbers<[1], [0], [0], [1], [0, 0, 1, 1], [], []>} : vector<16x128xf32>, vector<128x384xf32>, vector<16x384xf32> -> vector<16x384xf32>
    %c0_7 = arith.constant 0 : index
    %c0_8 = arith.constant 0 : index
    %5 = vector.load %arg4[%c0_7, %c0_8] : memref<1x384xf32, #tpu.memory_space<vmem>>, vector<1x384xf32>
    %6 = vector.broadcast %5 : vector<1x384xf32> to vector<16x384xf32>
    %7 = arith.addf %4, %6 : vector<16x384xf32>
    %8 = vector.extract_strided_slice %7 {offsets = [0, 0], sizes = [16, 128], strides = [1, 1]} : vector<16x384xf32> to vector<16x128xf32>
    %9 = vector.extract_strided_slice %7 {offsets = [0, 128], sizes = [16, 128], strides = [1, 1]} : vector<16x384xf32> to vector<16x128xf32>
    %10 = vector.extract_strided_slice %7 {offsets = [0, 256], sizes = [16, 128], strides = [1, 1]} : vector<16x384xf32> to vector<16x128xf32>
    %11 = vector.shape_cast %1 : vector<4x1x128xf32> to vector<1x4x1x128xf32>
    %12 = vector.shape_cast %8 : vector<16x128xf32> to vector<2x1x8x128xf32>
    %13 = vector.broadcast %12 : vector<2x1x8x128xf32> to vector<2x4x8x128xf32>
    %14 = vector.broadcast %11 : vector<1x4x1x128xf32> to vector<2x4x8x128xf32>
    %15 = arith.mulf %13, %14 : vector<2x4x8x128xf32>
    %16 = vector.shape_cast %15 : vector<2x4x8x128xf32> to vector<8x8x128xf32>
    %17 = vector.shape_cast %10 : vector<16x128xf32> to vector<2x1x8x128xf32>
    %18 = vector.broadcast %17 : vector<2x1x8x128xf32> to vector<2x4x8x128xf32>
    %19 = vector.broadcast %11 : vector<1x4x1x128xf32> to vector<2x4x8x128xf32>
    %20 = arith.mulf %18, %19 : vector<2x4x8x128xf32>
    %21 = vector.shape_cast %20 : vector<2x4x8x128xf32> to vector<8x8x128xf32>
    %22 = vector.shape_cast %9 : vector<16x128xf32> to vector<2x1x8x128xf32>
    %23 = vector.shape_cast %22 : vector<2x1x8x128xf32> to vector<2x1x8x128xf32>
    %24 = vector.broadcast %23 : vector<2x1x8x128xf32> to vector<2x4x8x128xf32>
    %25 = vector.shape_cast %24 : vector<2x4x8x128xf32> to vector<8x8x128xf32>
    %cst_9 = arith.constant dense<0.000000e+00> : vector<8x8x8xf32>
    %26 = tpu.matmul %16, %25, %cst_9 {dimension_numbers = #tpu.dot_dimension_numbers<[2], [2], [1], [1], [0, 0, 0, 1, 1, 1], [0], [0]>} : vector<8x8x128xf32>, vector<8x8x128xf32>, vector<8x8x8xf32> -> vector<8x8x8xf32>
    %cst_10 = arith.constant dense<0xFF800000> : vector<8x8xf32>
    %27 = vector.multi_reduction <maximumf>, %26, %cst_10 [2] : vector<8x8x8xf32> to vector<8x8xf32>
    %28 = vector.shape_cast %27 : vector<8x8xf32> to vector<8x8x1xf32>
    %29 = vector.broadcast %28 : vector<8x8x1xf32> to vector<8x8x8xf32>
    %30 = arith.subf %26, %29 : vector<8x8x8xf32>
    %31 = math.exp %30 : vector<8x8x8xf32>
    %cst_11 = arith.constant dense<0.000000e+00> : vector<8x8xf32>
    %32 = vector.multi_reduction <add>, %31, %cst_11 [2] : vector<8x8x8xf32> to vector<8x8xf32>
    %33 = vector.shape_cast %32 : vector<8x8xf32> to vector<8x8x1xf32>
    %34 = tpu.reciprocal %33 {approx = true} : vector<8x8x1xf32> -> vector<8x8x1xf32>
    %35 = arith.mulf %33, %34 : vector<8x8x1xf32>
    %cst_12 = arith.constant 2.000000e+00 : f32
    %36 = vector.broadcast %cst_12 : f32 to vector<8x8x1xf32>
    %37 = arith.subf %36, %35 : vector<8x8x1xf32>
    %38 = arith.mulf %34, %37 : vector<8x8x1xf32>
    %39 = vector.broadcast %38 : vector<8x8x1xf32> to vector<8x8x8xf32>
    %40 = arith.mulf %31, %39 : vector<8x8x8xf32>
    %cst_13 = arith.constant dense<0.000000e+00> : vector<8x8x128xf32>
    %41 = tpu.matmul %40, %21, %cst_13 {dimension_numbers = #tpu.dot_dimension_numbers<[2], [1], [1], [2], [0, 0, 0, 1, 1, 2], [0], [0]>} : vector<8x8x8xf32>, vector<8x8x128xf32>, vector<8x8x128xf32> -> vector<8x8x128xf32>
    %42 = vector.shape_cast %41 : vector<8x8x128xf32> to vector<2x4x8x128xf32>
    %cst_14 = arith.constant dense<0.000000e+00> : vector<2x8x128xf32>
    %43 = vector.multi_reduction <add>, %42, %cst_14 [1] : vector<2x4x8x128xf32> to vector<2x8x128xf32>
    %44 = vector.shape_cast %43 : vector<2x8x128xf32> to vector<16x128xf32>
    %c0_15 = arith.constant 0 : index
    %c0_16 = arith.constant 0 : index
    %45 = vector.load %arg5[%c0_15, %c0_16] : memref<128x128xf32, #tpu.memory_space<vmem>>, vector<128x128xf32>
    %cst_17 = arith.constant dense<0.000000e+00> : vector<16x128xf32>
    %46 = tpu.matmul %44, %45, %cst_17 {dimension_numbers = #tpu.dot_dimension_numbers<[1], [0], [0], [1], [0, 0, 1, 1], [], []>} : vector<16x128xf32>, vector<128x128xf32>, vector<16x128xf32> -> vector<16x128xf32>
    %c0_18 = arith.constant 0 : index
    %c0_19 = arith.constant 0 : index
    %47 = vector.load %arg6[%c0_18, %c0_19] : memref<1x128xf32, #tpu.memory_space<vmem>>, vector<1x128xf32>
    %48 = vector.broadcast %47 : vector<1x128xf32> to vector<16x128xf32>
    %49 = arith.addf %46, %48 : vector<16x128xf32>
    %50 = arith.addf %0, %49 : vector<16x128xf32>
    %c0_20 = arith.constant 0 : index
    %c0_21 = arith.constant 0 : index
    %51 = vector.load %arg7[%c0_20, %c0_21] : memref<1x128xf32, #tpu.memory_space<vmem>>, vector<1x128xf32>
    %c0_22 = arith.constant 0 : index
    %c0_23 = arith.constant 0 : index
    %52 = vector.load %arg8[%c0_22, %c0_23] : memref<1x128xf32, #tpu.memory_space<vmem>>, vector<1x128xf32>
    %cst_24 = arith.constant dense<0.000000e+00> : vector<16xf32>
    %53 = vector.multi_reduction <add>, %50, %cst_24 [1] : vector<16x128xf32> to vector<16xf32>
    %54 = vector.shape_cast %53 : vector<16xf32> to vector<16x1xf32>
    %cst_25 = arith.constant 3.125000e-02 : f32
    %55 = vector.broadcast %cst_25 : f32 to vector<16x1xf32>
    %56 = arith.mulf %54, %55 : vector<16x1xf32>
    %57 = vector.broadcast %56 : vector<16x1xf32> to vector<16x128xf32>
    %58 = arith.subf %50, %57 : vector<16x128xf32>
    %59 = arith.mulf %58, %58 : vector<16x128xf32>
    %60 = vector.broadcast %2 : vector<1x128xf32> to vector<16x128xf32>
    %61 = arith.mulf %59, %60 : vector<16x128xf32>
    %cst_26 = arith.constant dense<0.000000e+00> : vector<16xf32>
    %62 = vector.multi_reduction <add>, %61, %cst_26 [1] : vector<16x128xf32> to vector<16xf32>
    %63 = vector.shape_cast %62 : vector<16xf32> to vector<16x1xf32>
    %cst_27 = arith.constant 3.125000e-02 : f32
    %64 = vector.broadcast %cst_27 : f32 to vector<16x1xf32>
    %65 = arith.mulf %63, %64 : vector<16x1xf32>
    %cst_28 = arith.constant 9.99999974E-6 : f32
    %66 = vector.broadcast %cst_28 : f32 to vector<16x1xf32>
    %67 = arith.addf %65, %66 : vector<16x1xf32>
    %68 = math.rsqrt %67 : vector<16x1xf32>
    %69 = vector.broadcast %68 : vector<16x1xf32> to vector<16x128xf32>
    %70 = arith.mulf %58, %69 : vector<16x128xf32>
    %71 = vector.broadcast %51 : vector<1x128xf32> to vector<16x128xf32>
    %72 = arith.mulf %70, %71 : vector<16x128xf32>
    %73 = vector.broadcast %52 : vector<1x128xf32> to vector<16x128xf32>
    %74 = arith.addf %72, %73 : vector<16x128xf32>
    %c0_29 = arith.constant 0 : index
    %c0_30 = arith.constant 0 : index
    %75 = vector.load %arg9[%c0_29, %c0_30] : memref<128x128xf32, #tpu.memory_space<vmem>>, vector<128x128xf32>
    %cst_31 = arith.constant dense<0.000000e+00> : vector<16x128xf32>
    %76 = tpu.matmul %74, %75, %cst_31 {dimension_numbers = #tpu.dot_dimension_numbers<[1], [0], [0], [1], [0, 0, 1, 1], [], []>} : vector<16x128xf32>, vector<128x128xf32>, vector<16x128xf32> -> vector<16x128xf32>
    %c0_32 = arith.constant 0 : index
    %c0_33 = arith.constant 0 : index
    %77 = vector.load %arg10[%c0_32, %c0_33] : memref<1x128xf32, #tpu.memory_space<vmem>>, vector<1x128xf32>
    %78 = vector.broadcast %77 : vector<1x128xf32> to vector<16x128xf32>
    %79 = arith.addf %76, %78 : vector<16x128xf32>
    %cst_34 = arith.constant 5.000000e-01 : f32
    %80 = vector.broadcast %cst_34 : f32 to vector<16x128xf32>
    %81 = arith.mulf %79, %80 : vector<16x128xf32>
    %cst_35 = arith.constant 0.707106769 : f32
    %82 = vector.broadcast %cst_35 : f32 to vector<16x128xf32>
    %83 = arith.mulf %79, %82 : vector<16x128xf32>
    %cst_36 = arith.constant 0.000000e+00 : f32
    %84 = vector.broadcast %cst_36 : f32 to vector<16x128xf32>
    %85 = arith.cmpf oge, %83, %84 : vector<16x128xf32>
    %cst_37 = arith.constant 1.000000e+00 : f32
    %cst_38 = arith.constant -1.000000e+00 : f32
    %86 = vector.broadcast %cst_37 : f32 to vector<16x128xf32>
    %87 = vector.broadcast %cst_38 : f32 to vector<16x128xf32>
    %88 = arith.select %85, %86, %87 : vector<16x128xi1>, vector<16x128xf32>
    %89 = math.absf %83 : vector<16x128xf32>
    %cst_39 = arith.constant 0.327591091 : f32
    %90 = vector.broadcast %cst_39 : f32 to vector<16x128xf32>
    %91 = arith.mulf %90, %89 : vector<16x128xf32>
    %cst_40 = arith.constant 1.000000e+00 : f32
    %92 = vector.broadcast %cst_40 : f32 to vector<16x128xf32>
    %93 = arith.addf %92, %91 : vector<16x128xf32>
    %cst_41 = arith.constant 1.000000e+00 : f32
    %94 = vector.broadcast %cst_41 : f32 to vector<16x128xf32>
    %95 = arith.divf %94, %93 : vector<16x128xf32>
    %cst_42 = arith.constant 1.06140542 : f32
    %96 = vector.broadcast %cst_42 : f32 to vector<16x128xf32>
    %97 = arith.mulf %96, %95 : vector<16x128xf32>
    %cst_43 = arith.constant -1.45315206 : f32
    %98 = vector.broadcast %cst_43 : f32 to vector<16x128xf32>
    %99 = arith.addf %97, %98 : vector<16x128xf32>
    %100 = arith.mulf %99, %95 : vector<16x128xf32>
    %cst_44 = arith.constant 1.42141378 : f32
    %101 = vector.broadcast %cst_44 : f32 to vector<16x128xf32>
    %102 = arith.addf %100, %101 : vector<16x128xf32>
    %103 = arith.mulf %102, %95 : vector<16x128xf32>
    %cst_45 = arith.constant -0.284496725 : f32
    %104 = vector.broadcast %cst_45 : f32 to vector<16x128xf32>
    %105 = arith.addf %103, %104 : vector<16x128xf32>
    %106 = arith.mulf %105, %95 : vector<16x128xf32>
    %cst_46 = arith.constant 0.254829586 : f32
    %107 = vector.broadcast %cst_46 : f32 to vector<16x128xf32>
    %108 = arith.addf %106, %107 : vector<16x128xf32>
    %109 = arith.mulf %108, %95 : vector<16x128xf32>
    %cst_47 = arith.constant 0.000000e+00 : f32
    %110 = vector.broadcast %cst_47 : f32 to vector<16x128xf32>
    %111 = arith.subf %110, %89 : vector<16x128xf32>
    %112 = arith.mulf %111, %89 : vector<16x128xf32>
    %113 = math.exp %112 : vector<16x128xf32>
    %114 = arith.mulf %109, %113 : vector<16x128xf32>
    %cst_48 = arith.constant 1.000000e+00 : f32
    %115 = vector.broadcast %cst_48 : f32 to vector<16x128xf32>
    %116 = arith.subf %115, %114 : vector<16x128xf32>
    %117 = arith.mulf %88, %116 : vector<16x128xf32>
    %cst_49 = arith.constant 1.000000e+00 : f32
    %118 = vector.broadcast %cst_49 : f32 to vector<16x128xf32>
    %119 = arith.addf %118, %117 : vector<16x128xf32>
    %120 = arith.mulf %81, %119 : vector<16x128xf32>
    %c0_50 = arith.constant 0 : index
    %c0_51 = arith.constant 0 : index
    %121 = vector.load %arg11[%c0_50, %c0_51] : memref<128x128xf32, #tpu.memory_space<vmem>>, vector<128x128xf32>
    %cst_52 = arith.constant dense<0.000000e+00> : vector<16x128xf32>
    %122 = tpu.matmul %120, %121, %cst_52 {dimension_numbers = #tpu.dot_dimension_numbers<[1], [0], [0], [1], [0, 0, 1, 1], [], []>} : vector<16x128xf32>, vector<128x128xf32>, vector<16x128xf32> -> vector<16x128xf32>
    %c0_53 = arith.constant 0 : index
    %c0_54 = arith.constant 0 : index
    %123 = vector.load %arg12[%c0_53, %c0_54] : memref<1x128xf32, #tpu.memory_space<vmem>>, vector<1x128xf32>
    %124 = vector.broadcast %123 : vector<1x128xf32> to vector<16x128xf32>
    %125 = arith.addf %122, %124 : vector<16x128xf32>
    %126 = arith.addf %74, %125 : vector<16x128xf32>
    %c0_55 = arith.constant 0 : index
    %c0_56 = arith.constant 0 : index
    %127 = vector.load %arg13[%c0_55, %c0_56] : memref<1x128xf32, #tpu.memory_space<vmem>>, vector<1x128xf32>
    %c0_57 = arith.constant 0 : index
    %c0_58 = arith.constant 0 : index
    %128 = vector.load %arg14[%c0_57, %c0_58] : memref<1x128xf32, #tpu.memory_space<vmem>>, vector<1x128xf32>
    %cst_59 = arith.constant dense<0.000000e+00> : vector<16xf32>
    %129 = vector.multi_reduction <add>, %126, %cst_59 [1] : vector<16x128xf32> to vector<16xf32>
    %130 = vector.shape_cast %129 : vector<16xf32> to vector<16x1xf32>
    %cst_60 = arith.constant 3.125000e-02 : f32
    %131 = vector.broadcast %cst_60 : f32 to vector<16x1xf32>
    %132 = arith.mulf %130, %131 : vector<16x1xf32>
    %133 = vector.broadcast %132 : vector<16x1xf32> to vector<16x128xf32>
    %134 = arith.subf %126, %133 : vector<16x128xf32>
    %135 = arith.mulf %134, %134 : vector<16x128xf32>
    %136 = vector.broadcast %2 : vector<1x128xf32> to vector<16x128xf32>
    %137 = arith.mulf %135, %136 : vector<16x128xf32>
    %cst_61 = arith.constant dense<0.000000e+00> : vector<16xf32>
    %138 = vector.multi_reduction <add>, %137, %cst_61 [1] : vector<16x128xf32> to vector<16xf32>
    %139 = vector.shape_cast %138 : vector<16xf32> to vector<16x1xf32>
    %cst_62 = arith.constant 3.125000e-02 : f32
    %140 = vector.broadcast %cst_62 : f32 to vector<16x1xf32>
    %141 = arith.mulf %139, %140 : vector<16x1xf32>
    %cst_63 = arith.constant 9.99999974E-6 : f32
    %142 = vector.broadcast %cst_63 : f32 to vector<16x1xf32>
    %143 = arith.addf %141, %142 : vector<16x1xf32>
    %144 = math.rsqrt %143 : vector<16x1xf32>
    %145 = vector.broadcast %144 : vector<16x1xf32> to vector<16x128xf32>
    %146 = arith.mulf %134, %145 : vector<16x128xf32>
    %147 = vector.broadcast %127 : vector<1x128xf32> to vector<16x128xf32>
    %148 = arith.mulf %146, %147 : vector<16x128xf32>
    %149 = vector.broadcast %128 : vector<1x128xf32> to vector<16x128xf32>
    %150 = arith.addf %148, %149 : vector<16x128xf32>
    %c0_64 = arith.constant 0 : index
    %c0_65 = arith.constant 0 : index
    %151 = vector.load %arg15[%c0_64, %c0_65] : memref<16x128xf32, #tpu.memory_space<vmem>>, vector<16x128xf32>
    tpu.vector_store %arg15[%c0_64, %c0_65], %150 {strides = array<i32>} : memref<16x128xf32, #tpu.memory_space<vmem>>, vector<16x128xf32>,
    return
  }
  func.func @transform_0(%arg0: i32) -> (i32, i32) {
    %c0_i32 = arith.constant 0 : i32
    %c0_i32_0 = arith.constant 0 : i32
    return %arg0, %c0_i32 : i32, i32
  }
  func.func @transform_1(%arg0: i32) -> (i32, i32, i32) {
    %c0_i32 = arith.constant 0 : i32
    %c0_i32_0 = arith.constant 0 : i32
    %c0_i32_1 = arith.constant 0 : i32
    %c0_i32_2 = arith.constant 0 : i32
    return %c0_i32, %c0_i32_0, %c0_i32_1 : i32, i32, i32
  }
  func.func @transform_2(%arg0: i32) -> (i32, i32) {
    %c0_i32 = arith.constant 0 : i32
    %c0_i32_0 = arith.constant 0 : i32
    %c0_i32_1 = arith.constant 0 : i32
    return %c0_i32, %c0_i32_0 : i32, i32
  }
  func.func @transform_3(%arg0: i32) -> (i32, i32) {
    %c0_i32 = arith.constant 0 : i32
    %c0_i32_0 = arith.constant 0 : i32
    %c0_i32_1 = arith.constant 0 : i32
    return %c0_i32, %c0_i32_0 : i32, i32
  }
  func.func @transform_4(%arg0: i32) -> (i32, i32) {
    %c0_i32 = arith.constant 0 : i32
    %c0_i32_0 = arith.constant 0 : i32
    %c0_i32_1 = arith.constant 0 : i32
    return %c0_i32, %c0_i32_0 : i32, i32
  }
  func.func @transform_5(%arg0: i32) -> (i32, i32) {
    %c0_i32 = arith.constant 0 : i32
    %c0_i32_0 = arith.constant 0 : i32
    %c0_i32_1 = arith.constant 0 : i32
    return %c0_i32, %c0_i32_0 : i32, i32
  }
  func.func @transform_6(%arg0: i32) -> (i32, i32) {
    %c0_i32 = arith.constant 0 : i32
    %c0_i32_0 = arith.constant 0 : i32
    %c0_i32_1 = arith.constant 0 : i32
    return %c0_i32, %c0_i32_0 : i32, i32
  }
  func.func @transform_7(%arg0: i32) -> (i32, i32) {
    %c0_i32 = arith.constant 0 : i32
    %c0_i32_0 = arith.constant 0 : i32
    %c0_i32_1 = arith.constant 0 : i32
    return %c0_i32, %c0_i32_0 : i32, i32
  }
  func.func @transform_8(%arg0: i32) -> (i32, i32) {
    %c0_i32 = arith.constant 0 : i32
    %c0_i32_0 = arith.constant 0 : i32
    %c0_i32_1 = arith.constant 0 : i32
    return %c0_i32, %c0_i32_0 : i32, i32
  }
  func.func @transform_9(%arg0: i32) -> (i32, i32) {
    %c0_i32 = arith.constant 0 : i32
    %c0_i32_0 = arith.constant 0 : i32
    %c0_i32_1 = arith.constant 0 : i32
    return %c0_i32, %c0_i32_0 : i32, i32
  }
  func.func @transform_10(%arg0: i32) -> (i32, i32) {
    %c0_i32 = arith.constant 0 : i32
    %c0_i32_0 = arith.constant 0 : i32
    %c0_i32_1 = arith.constant 0 : i32
    return %c0_i32, %c0_i32_0 : i32, i32
  }
  func.func @transform_11(%arg0: i32) -> (i32, i32) {
    %c0_i32 = arith.constant 0 : i32
    %c0_i32_0 = arith.constant 0 : i32
    %c0_i32_1 = arith.constant 0 : i32
    return %c0_i32, %c0_i32_0 : i32, i32
  }
  func.func @transform_12(%arg0: i32) -> (i32, i32) {
    %c0_i32 = arith.constant 0 : i32
    %c0_i32_0 = arith.constant 0 : i32
    %c0_i32_1 = arith.constant 0 : i32
    return %c0_i32, %c0_i32_0 : i32, i32
  }
  func.func @transform_13(%arg0: i32) -> (i32, i32) {
    %c0_i32 = arith.constant 0 : i32
    %c0_i32_0 = arith.constant 0 : i32
    %c0_i32_1 = arith.constant 0 : i32
    return %c0_i32, %c0_i32_0 : i32, i32
  }
  func.func @transform_14(%arg0: i32) -> (i32, i32) {
    %c0_i32 = arith.constant 0 : i32
    %c0_i32_0 = arith.constant 0 : i32
    return %arg0, %c0_i32 : i32, i32
  }
}

</mosaic_0001>

<bundles_post_ra>
// kernel: tpu_custom_call.1
= control target key start
LH: loop header
LB: loop body
LE: loop exit
PB: predicated region body
PF: predicated region fallthrough
CT: control target
= control target key end

     0   :  { %19 = vsyncpa [#allocation3], 0  ;;  %s3013_s0 = inlined_call_operand.hbm [shape: f32[16,128], index: 0, kind: input, shape index: {}]   ;;  %s3014_s1 = inlined_call_operand.hbm [shape: f32[4,1,128], index: 1, kind: input, shape index: {}]   ;;  %s3015_s2 = inlined_call_operand.hbm [shape: f32[128,384], index: 2, kind: input, shape index: {}]   ;;  %s3016_s3 = inlined_call_operand.vmem [shape: f32[1,384], index: 3, kind: input, shape index: {}]   ;;  %s3017_s4 = inlined_call_operand.hbm [shape: f32[128,128], index: 4, kind: input, shape index: {}]   ;;  %s3018_s5 = inlined_call_operand.vmem [shape: f32[1,128], index: 5, kind: input, shape index: {}]   ;;  %s3019_s6 = inlined_call_operand.vmem [shape: f32[1,128], index: 6, kind: input, shape index: {}]   ;;  %s3020_s7 = inlined_call_operand.vmem [shape: f32[1,128], index: 7, kind: input, shape index: {}]   ;;  %s3021_s8 = inlined_call_operand.hbm [shape: f32[128,128], index: 8, kind: input, shape index: {}]   ;;  %s3022_s9 = inlined_call_operand.vmem [shape: f32[1,128], index: 9, kind: input, shape index: {}]   ;;  %s3023_s10 = inlined_call_operand.hbm [shape: f32[128,128], index: 10, kind: input, shape index: {}]   ;;  %s3024_s11 = inlined_call_operand.vmem [shape: f32[1,128], index: 11, kind: input, shape index: {}]   ;;  %s3025_s12 = inlined_call_operand.vmem [shape: f32[1,128], index: 12, kind: input, shape index: {}]   ;;  %s3026_s13 = inlined_call_operand.vmem [shape: f32[1,128], index: 13, kind: input, shape index: {}]   ;;  %s3027_s14 = inlined_call_operand.hbm [shape: f32[16,128], index: 14, kind: output, shape index: {}]  }
   0x1   :  { %20 = vsyncpa [#allocation6], 0 }
   0x2   :  { %21 = vsyncpa [#allocation9], 0 }
   0x3   :  { %22 = vsyncpa [#allocation12], 0 }
   0x4   :  { %23 = vsyncpa [#allocation4], 0  ;;  %s2679_s29 = smov [#allocation5]  }
   0x5   :  { %s41_s30 = sshll.u32 %s2679_s29, 4  ;;  %s42_s30 = int_to_ptr.vmem [resolvable:$true] %s41_s30 }
   0x6   :  { %s2537_s15 = scalar_lea.vmem %s42_s30, 64  ;;  %p2542_p1 = scmp.lt.s32.totalorder %s42_s30, %s42_s30 }
   0x7   :  { %p2538_p0 = scmp.ne.s32.totalorder %s42_s30, %s2537_s15  ;;  %p2543_p2 = scmp.lt.s32.totalorder %s2537_s15, %s2537_s15 }
   0x9   :  { %p2544_p3 = por %p2543_p2, %p2542_p1 }
   0xb   :  { %p2545_p4 = pnand %p2544_p3, %p2538_p0 }
   0xd   :  { %2548 = shalt.err (!%p2545_p4)
}
   0xe   :  { %s2680_s16 = smov 16   ;;  %s2681_s17 = smov 1  }
   0xf   :  { %47 = dma.hbm_to_vmem [thread:$0]  %s3014_s1, 64, %s42_s30, [#allocation6], %s2680_s16, %s2680_s16, %s2681_s17  }
  0x10   :  { %s2682_s20 = smov [#allocation8]   ;;  %s2683_s22 = smov [#allocation2]  }
  0x11   :  { %s67_s21 = sshll.u32 %s2682_s20, 4  ;;  %s29_s23 = sshll.u32 %s2683_s22, 4  ;;  %s68_s21 = int_to_ptr.vmem [resolvable:$true] %s67_s21  ;;  %s30_s23 = int_to_ptr.vmem [resolvable:$true] %s29_s23 }
  0x12   :  { %s2557_s24 = scalar_lea.vmem %s68_s21, 2048  ;;  %p2562_p6 = scmp.lt.s32.totalorder %s68_s21, %s68_s21 }
  0x13   :  { %p2558_p5 = scmp.ne.s32.totalorder %s68_s21, %s2557_s24  ;;  %p2563_p7 = scmp.lt.s32.totalorder %s2557_s24, %s2557_s24 }
  0x15   :  { %p2564_p8 = por %p2563_p7, %p2562_p6 }
  0x17   :  { %p2565_p9 = pnand %p2564_p8, %p2558_p5 }
  0x19   :  { %2568 = shalt.err (!%p2565_p9)
}
  0x1a   :  { %s2684_s25 = smov 128   ;;  %s2685_s26 = smov 8  }
  0x1b   :  { %73 = dma.hbm_to_vmem [thread:$0]  %s3017_s4, 2048, %s68_s21, [#allocation9], %s2684_s25, %s2684_s25, %s2685_s26  }
  0x1c   :  { %s2577_s1 = scalar_lea.vmem %s30_s23, 256  ;;  %p2582_p11 = scmp.lt.s32.totalorder %s30_s23, %s30_s23 }
  0x1d   :  { %p2578_p10 = scmp.ne.s32.totalorder %s30_s23, %s2577_s1  ;;  %p2583_p12 = scmp.lt.s32.totalorder %s2577_s1, %s2577_s1 }
  0x1f   :  { %p2584_p13 = por %p2583_p12, %p2582_p11 }
  0x21   :  { %p2585_p0 = pnand %p2584_p13, %p2578_p10 }
  0x23   :  { %2588 = shalt.err (!%p2585_p0)
}
  0x24   :  { %35 = dma.hbm_to_vmem [thread:$0]  %s3013_s0, 256, %s30_s23, [#allocation3], %s2684_s25, %s2684_s25, %s2685_s26  }
  0x25   :  { %s2686_s15 = smov [#allocation7]  }
  0x26   :  { %s53_s16 = sshll.u32 %s2686_s15, 4  ;;  %s54_s16 = int_to_ptr.vmem [resolvable:$true] %s53_s16 }
  0x27   :  { %s2597_s17 = scalar_lea.vmem %s54_s16, 6144  ;;  %p2602_p2 = scmp.lt.s32.totalorder %s54_s16, %s54_s16 }
  0x28   :  { %p2598_p1 = scmp.ne.s32.totalorder %s54_s16, %s2597_s17  ;;  %p2603_p3 = scmp.lt.s32.totalorder %s2597_s17, %s2597_s17 }
  0x2a   :  { %p2604_p4 = por %p2603_p3, %p2602_p2 }
  0x2c   :  { %p2605_p5 = pnand %p2604_p4, %p2598_p1 }
  0x2e   :  { %2608 = shalt.err (!%p2605_p5)
}
  0x2f   :  { %s2687_s4 = smov 384   ;;  %s2688_s18 = smov 24  }
  0x30   :  { %59 = dma.hbm_to_vmem [thread:$0]  %s3015_s2, 6144, %s54_s16, [#allocation6], %s2687_s4, %s2687_s4, %s2688_s18  }
  0x31   :  { %s2689_s21 = smov [#allocation10]   ;;  %s2690_s24 = smov [#allocation11]  }
  0x32   :  { %s85_s22 = sshll.u32 %s2689_s21, 4  ;;  %s99_s0 = sshll.u32 %s2690_s24, 4  ;;  %s86_s22 = int_to_ptr.vmem [resolvable:$true] %s85_s22  ;;  %s100_s0 = int_to_ptr.vmem [resolvable:$true] %s99_s0 }
  0x33   :  { %s2617_s23 = scalar_lea.vmem %s86_s22, 2048  ;;  %p2622_p7 = scmp.lt.s32.totalorder %s86_s22, %s86_s22 }
  0x34   :  { %p2618_p6 = scmp.ne.s32.totalorder %s86_s22, %s2617_s23  ;;  %p2623_p8 = scmp.lt.s32.totalorder %s2617_s23, %s2617_s23 }
  0x36   :  { %p2624_p9 = por %p2623_p8, %p2622_p7 }
  0x38   :  { %p2625_p10 = pnand %p2624_p9, %p2618_p6 }
  0x3a   :  { %2628 = shalt.err (!%p2625_p10)
}
  0x3b   :  { %91 = dma.hbm_to_vmem [thread:$0]  %s3021_s8, 2048, %s86_s22, [#allocation9], %s2684_s25, %s2684_s25, %s2685_s26  }
  0x3c   :  { %s2637_s2 = scalar_lea.vmem %s100_s0, 2048  ;;  %p2642_p12 = scmp.lt.s32.totalorder %s100_s0, %s100_s0 }
  0x3d   :  { %p2638_p11 = scmp.ne.s32.totalorder %s100_s0, %s2637_s2  ;;  %p2643_p13 = scmp.lt.s32.totalorder %s2637_s2, %s2637_s2 }
  0x3f   :  { %p2644_p0 = por %p2643_p13, %p2642_p12 }
  0x41   :  { %p2645_p1 = pnand %p2644_p0, %p2638_p11 }
  0x43   :  { %2648 = shalt.err (!%p2645_p1)
}
  0x44   :  { %105 = dma.hbm_to_vmem [thread:$0]  %s3023_s10, 2048, %s100_s0, [#allocation12], %s2684_s25, %s2684_s25, %s2685_s26  }
  0x45   :  { %2669 = dma.done.wait [#allocation3], 256  }
  0x46   :  { %2670 = vsyncadd [#allocation3], 4294967040 }
  0x47   :  { %2671 = dma.done.wait [#allocation6], 6208  }
  0x48   :  { %2672 = vsyncadd [#allocation6], 4294961088 }
  0x49   :  { %2673 = dma.done.wait [#allocation9], 4096  }
  0x4a   :  { %2674 = vsyncadd [#allocation9], 4294963200 }
  0x4b   :  { %2675 = dma.done.wait [#allocation12], 2048  }
  0x4c   :  { %2676 = vsyncadd [#allocation12], 4294965248  ;;  %v2691_v0 = vmov 0.0   ;;  %v190_v1 = vld [vmem:[#allocation7 + $0x170] sm:$0xff]  ;;  %v189_v2 = vld [vmem:[#allocation7 + $0x168] sm:$0xff]  ;;  %vm2692_vm0 = vmmov 0   ;;  %v194_v51 = vlaneseq }
  0x4d   :  { %273 = vmatprep.mubr.f32.mxu0 %v2691_v0  ;;  %v187_v3 = vld [vmem:[#allocation7 + $0x158] sm:$0xff]  ;;  %209 = vmatprep.subr.mxu0 %v190_v1  ;;  %v186_v4 = vld [vmem:[#allocation7 + $0x150] sm:$0xff]  ;;  %v184_v5 = vld [vmem:[#allocation7 + $0x140] sm:$0xff]  ;;  %vm961_vm1 = vcmask 64512   ;;  %vm136_vm2 = vcmask 1040384   ;;  %s2694_s21 = smov [#allocation13]  }
  0x4e   :  { %210 = vmatpush1.msra.mxu0 %v189_v2  ;;  %v183_v6 = vld [vmem:[#allocation7 + $0x138] sm:$0xff]  ;;  %v181_v7 = vld [vmem:[#allocation7 + $0x128] sm:$0xff]  ;;  %v180_v8 = vld [vmem:[#allocation7 + $0x120] sm:$0xff]  ;;  %v2816_v52 = vshrl.u32 %v194_v51, 7  ;;  %s2111_s22 = sshll.u32 %s2694_s21, 4  ;;  %s2112_s22 = int_to_ptr.vmem [resolvable:$true] %s2111_s22 }
  0x4f   :  { %211 = vmatprep.subr.mxu0 %v187_v3  ;;  %v178_v9 = vld [vmem:[#allocation7 + $0x110] sm:$0xff]  ;;  %v177_v10 = vld [vmem:[#allocation7 + $0x108] sm:$0xff]  ;;  %v175_v11 = vld [vmem:[#allocation7 + $0xf8] sm:$0xff]  ;;  %s2649_s24 = scalar_lea.vmem %s2112_s22, 256  ;;  %p2654_p3 = scmp.lt.s32.totalorder %s2112_s22, %s2112_s22 }
  0x50   :  { %212 = vmatpush1.msra.mxu0 %v186_v4  ;;  %v174_v12 = vld [vmem:[#allocation7 + $0xf0] sm:$0xff]  ;;  %v172_v13 = vld [vmem:[#allocation7 + $0xe0] sm:$0xff]  ;;  %v171_v15 = vld [vmem:[#allocation7 + $0xd8] sm:$0xff]  ;;  %v2819_v53 = vsub.s32 0, %v2816_v52  ;;  %v200_v55 = vsub.s32 1, %v2816_v52  ;;  %p2650_p2 = scmp.ne.s32.totalorder %s2112_s22, %s2649_s24  ;;  %p2655_p4 = scmp.lt.s32.totalorder %s2649_s24, %s2649_s24 }
  0x51   :  { %213 = vmatprep.subr.mxu0 %v184_v5  ;;  %v2801_v14 = vld [vmem:[#allocation2] sm:$0xff]  ;;  %v191_v16 = vld [vmem:[#allocation7 + $0x178] sm:$0xff]  ;;  %v188_v17 = vld [vmem:[#allocation7 + $0x160] sm:$0xff] }
  0x52   :  { %214 = vmatpush1.msra.mxu0 %v183_v6  ;;  %2277 = vmatprep.mubr.f32.mxu1 %v2801_v14  ;;  %v169_v18 = vld [vmem:[#allocation7 + $0xc8] sm:$0xff]  ;;  %v168_v19 = vld [vmem:[#allocation7 + $0xc0] sm:$0xff]  ;;  %v166_v21 = vld [vmem:[#allocation7 + $0xb0] sm:$0xff]  ;;  %p2656_p5 = por %p2655_p4, %p2654_p3 }
  0x53   :  { %215 = vmatprep.subr.mxu0 %v181_v7  ;;  %2245 = vmatprep.subr.mxu1 %v191_v16  ;;  %v185_v20 = vld [vmem:[#allocation7 + $0x148] sm:$0xff]  ;;  %v182_v23 = vld [vmem:[#allocation7 + $0x130] sm:$0xff]  ;;  %v163_v24 = vld [vmem:[#allocation7 + $0x98] sm:$0xff] }
  0x54   :  { %216 = vmatpush1.msra.mxu0 %v180_v8  ;;  %2246 = vmatpush3.msra.mxu1 %v191_v16  ;;  %v165_v22 = vld [vmem:[#allocation7 + $0xa8] sm:$0xff]  ;;  %v162_v25 = vld [vmem:[#allocation7 + $0x90] sm:$0xff]  ;;  %v179_v26 = vld [vmem:[#allocation7 + $0x118] sm:$0xff]  ;;  %p2657_p6 = pnand %p2656_p5, %p2650_p2 }
  0x55   :  { %217 = vmatprep.subr.mxu0 %v178_v9  ;;  %2247 = vmatprep.subr.mxu1 %v188_v17  ;;  %v160_v27 = vld [vmem:[#allocation7 + $0x80] sm:$0xff]  ;;  %v159_v28 = vld [vmem:[#allocation7 + $0x78] sm:$0xff]  ;;  %v157_v30 = vld [vmem:[#allocation7 + $0x68] sm:$0xff] }
  0x56   :  { %218 = vmatpush1.msra.mxu0 %v177_v10  ;;  %2248 = vmatpush3.msra.mxu1 %v188_v17  ;;  %v176_v29 = vld [vmem:[#allocation7 + $0x100] sm:$0xff]  ;;  %v173_v32 = vld [vmem:[#allocation7 + $0xe8] sm:$0xff]  ;;  %v154_v33 = vld [vmem:[#allocation7 + $0x50] sm:$0xff] }
  0x57   :  { %219 = vmatprep.subr.mxu0 %v175_v11  ;;  %2249 = vmatprep.subr.mxu1 %v185_v20  ;;  %v156_v31 = vld [vmem:[#allocation7 + $0x60] sm:$0xff]  ;;  %v153_v34 = vld [vmem:[#allocation7 + $0x48] sm:$0xff]  ;;  %v151_v35 = vld [vmem:[#allocation7 + $0x38] sm:$0xff] }
  0x58   :  { %220 = vmatpush1.msra.mxu0 %v174_v12  ;;  %2250 = vmatpush3.msra.mxu1 %v185_v20  ;;  %v150_v36 = vld [vmem:[#allocation7 + $0x30] sm:$0xff]  ;;  %v148_v37 = vld [vmem:[#allocation7 + $0x20] sm:$0xff]  ;;  %v147_v38 = vld [vmem:[#allocation7 + $0x18] sm:$0xff]  ;;  %v204_v20 = vsub.s32 2, %v2816_v52 }
  0x59   :  { %221 = vmatprep.subr.mxu0 %v172_v13  ;;  %2251 = vmatprep.subr.mxu1 %v182_v23  ;;  %v145_v39 = vld [vmem:[#allocation7 + $0x8] sm:$0xff]  ;;  %v144_v40 = vld [vmem:[#allocation7] sm:$0xff]  ;;  %v2807_v41 = vld [vmem:[#allocation2 + $0x8] sm:$0xff] }
  0x5a   :  { %222 = vmatpush1.msra.mxu0 %v171_v15  ;;  %2252 = vmatpush3.msra.mxu1 %v182_v23  ;;  %v170_v42 = vld [vmem:[#allocation7 + $0xd0] sm:$0xff]  ;;  %v167_v43 = vld [vmem:[#allocation7 + $0xb8] sm:$0xff]  ;;  %v164_v44 = vld [vmem:[#allocation7 + $0xa0] sm:$0xff] }
  0x5b   :  { %223 = vmatprep.subr.mxu0 %v169_v18  ;;  %2253 = vmatprep.subr.mxu1 %v179_v26  ;;  %v161_v45 = vld [vmem:[#allocation7 + $0x88] sm:$0xff]  ;;  %v158_v46 = vld [vmem:[#allocation7 + $0x70] sm:$0xff]  ;;  %v155_v47 = vld [vmem:[#allocation7 + $0x58] sm:$0xff] }
  0x5c   :  { %224 = vmatpush1.msra.mxu0 %v168_v19  ;;  %2254 = vmatpush3.msra.mxu1 %v179_v26  ;;  %v152_v48 = vld [vmem:[#allocation7 + $0x40] sm:$0xff]  ;;  %v149_v49 = vld [vmem:[#allocation7 + $0x28] sm:$0xff]  ;;  %v146_v50 = vld [vmem:[#allocation7 + $0x10] sm:$0xff] }
  0x5d   :  { %225 = vmatprep.subr.mxu0 %v166_v21  ;;  %2255 = vmatprep.subr.mxu1 %v176_v29  ;;  %v192_v54 = vld [vmem:[%s3016_s3] sm:$0x7]  ;;  %v2826_v57 = vld [vmem:[#allocation5] sm:$0x1]  ;;  %v2832_v1 = vld [vmem:[#allocation5 + $0x1] sm:$0x1] }
  0x5e   :  { %226 = vmatpush1.msra.mxu0 %v165_v22  ;;  %2256 = vmatpush3.msra.mxu1 %v176_v29  ;;  %v197_v56 = vrot.slane %v192_v54, %v2819_v53  ;;  %v201_v58 = vrot.slane %v192_v54, %v200_v55  ;;  %v2830_v61 = vrot.slane %v2826_v57, %v2819_v53  ;;  %v2834_v3 = vld [vmem:[#allocation5 + $0x2] sm:$0x1]  ;;  %v2851_v12 = vld [vmem:[#allocation5 + $0x3] sm:$0x1] }
  0x5f   :  { %227 = vmatprep.subr.mxu0 %v163_v24  ;;  %2257 = vmatprep.subr.mxu1 %v173_v32  ;;  %v2840_v5 = vrot.slane %v2832_v1, %v2819_v53  ;;  %v2844_v9 = vrot.slane %v2834_v3, %v2819_v53  ;;  %v2860_v15 = vrot.slane %v2851_v12, %v2819_v53 }
  0x60   :  { %228 = vmatpush1.msra.mxu0 %v162_v25  ;;  %2258 = vmatpush3.msra.mxu1 %v173_v32  ;;  %v205_v21 = vrot.slane %v192_v54, %v204_v20 }
  0x61   :  { %229 = vmatprep.subr.mxu0 %v160_v27  ;;  %2259 = vmatprep.subr.mxu1 %v170_v42 }
  0x62   :  { %230 = vmatpush1.msra.mxu0 %v159_v28  ;;  %2260 = vmatpush3.msra.mxu1 %v170_v42 }
  0x63   :  { %231 = vmatprep.subr.mxu0 %v157_v30  ;;  %2261 = vmatprep.subr.mxu1 %v167_v43 }
  0x64   :  { %232 = vmatpush1.msra.mxu0 %v156_v31  ;;  %2262 = vmatpush3.msra.mxu1 %v167_v43 }
  0x65   :  { %233 = vmatprep.subr.mxu0 %v154_v33  ;;  %2263 = vmatprep.subr.mxu1 %v164_v44 }
  0x66   :  { %234 = vmatpush1.msra.mxu0 %v153_v34  ;;  %2264 = vmatpush3.msra.mxu1 %v164_v44 }
  0x67   :  { %235 = vmatprep.subr.mxu0 %v151_v35  ;;  %2265 = vmatprep.subr.mxu1 %v161_v45 }
  0x68   :  { %236 = vmatpush1.msra.mxu0 %v150_v36  ;;  %2266 = vmatpush3.msra.mxu1 %v161_v45 }
  0x69   :  { %237 = vmatprep.subr.mxu0 %v148_v37  ;;  %2267 = vmatprep.subr.mxu1 %v158_v46 }
  0x6a   :  { %238 = vmatpush1.msra.mxu0 %v147_v38  ;;  %2268 = vmatpush3.msra.mxu1 %v158_v46 }
  0x6b   :  { %239 = vmatprep.subr.mxu0 %v145_v39  ;;  %2269 = vmatprep.subr.mxu1 %v155_v47 }
  0x6c   :  { %240 = vmatpush1.msra.mxu0 %v144_v40  ;;  %2270 = vmatpush3.msra.mxu1 %v155_v47 }
  0x6d   :  { %274 = vmatmul.mubr.f32.vlgmr.msra.gmra.mxu0 %v2801_v14  ;;  %2280 = vmatprep.subr.mxu0 %v2691_v0 }
  0x6e   :  { %279 = vmatprep.mubr.f32.mxu0 %v2691_v0  ;;  %2271 = vmatprep.subr.mxu1 %v152_v48 }
  0x6f   :  { %2272 = vmatpush3.msra.mxu1 %v152_v48 }
  0x70   :  { %2273 = vmatprep.subr.mxu1 %v149_v49 }
  0x71   :  { %280 = vmatmul.mubr.f32.gmra.mxu0 %v2807_v41  ;;  %2274 = vmatpush3.msra.mxu1 %v149_v49 }
  0x72   :  { %2282 = vmatprep.mubr.msk.f32.mxu0 %vm2692_vm0, %v2691_v0  ;;  %2275 = vmatprep.subr.mxu1 %v146_v50 }
  0x73   :  { %2276 = vmatpush3.msra.mxu1 %v146_v50 }
  0x74   :  { %2278 = vmatmul.mubr.f32.vlgmr.msra.gmra.mxu1 %v2807_v41  ;;  %2310 = vmatprep.subr.mxu1 %v2691_v0 }
  0x75   :  { %2312 = vmatprep.mubr.msk.f32.mxu1 %vm2692_vm0, %v2691_v0 }
 0x12d   :  { %v275_v59 = vpop.f32.mrf.mxu0 }
 0x12e   :  { %v276_v60 = vadd.f32 %v275_v59, %v197_v56 }
 0x12f   :  { %v277_v62 = vpop.f32.mrf.mxu0 }
 0x130   :  { %v278_v63 = vadd.f32 %v277_v62, %v201_v58  ;;  %v385_v4 = vmul.f32 %v2830_v61, %v276_v60  ;;  %v386_v10 = vmul.f32 %v2840_v5, %v276_v60  ;;  %v387_v13 = vmul.f32 %v2844_v9, %v276_v60 }
 0x131   :  { %v281_v2 = vpop.f32.mrf.mxu0  ;;  %v388_v16 = vmul.f32 %v2860_v15, %v276_v60 }
 0x132   :  { %2281 = vmatpush3.xpose.msra.mxu0 %v278_v63  ;;  %v282_v6 = vadd.f32 %v281_v2, %v197_v56 }
 0x133   :  { %2285 = vmatprep.subr.mxu0 %v2691_v0  ;;  %v283_v7 = vpop.f32.mrf.mxu0 }
 0x134   :  { %v284_v8 = vadd.f32 %v283_v7, %v201_v58  ;;  %v391_v11 = vmul.f32 %v2844_v9, %v282_v6  ;;  %v389_v17 = vmul.f32 %v2830_v61, %v282_v6  ;;  %v390_v18 = vmul.f32 %v2840_v5, %v282_v6  ;;  %v2279_v22 = vpop.f32.mrf.mxu1 }
 0x135   :  { %2283 = vmatmul.mubr.f32.vlgmr.msra.gmra.mxu0 %v385_v4  ;;  %v392_v19 = vmul.f32 %v2860_v15, %v282_v6  ;;  %v2883_v23 = vadd.f32 %v2279_v22, %v205_v21 }
 0x136   :  { %2286 = vmatpush3.xpose.msra.mxu0 %v278_v63  ;;  %2287 = vmatprep.mubr.msk.f32.mxu0 %vm2692_vm0, %v2691_v0  ;;  %v352_v24 = vpop.f32.mrf.mxu1 }
 0x137   :  { %2290 = vmatprep.subr.mxu0 %v2691_v0  ;;  %2311 = vmatpush3.xpose.msra.mxu1 %v284_v8  ;;  %v2885_v25 = vadd.f32 %v352_v24, %v205_v21 }
 0x138   :  { %2320 = vmatprep.subr.mxu1 %v2691_v0 }
 0x139   :  { %2288 = vmatmul.mubr.f32.vlgmr.msra.gmra.mxu0 %v386_v10  ;;  %v393_v26 = vmul.f32 %v2830_v61, %v2885_v25  ;;  %v394_v27 = vmul.f32 %v2840_v5, %v2885_v25 }
 0x13a   :  { %2291 = vmatpush3.xpose.msra.mxu0 %v278_v63  ;;  %2292 = vmatprep.mubr.msk.f32.mxu0 %vm2692_vm0, %v2691_v0 }
 0x13b   :  { %2295 = vmatprep.subr.mxu0 %v2691_v0  ;;  %2313 = vmatmul.mubr.f32.vlgmr.msra.gmra.mxu1 %v391_v11 }
 0x13c   :  { %2322 = vmatprep.mubr.msk.f32.mxu1 %vm2692_vm0, %v2691_v0  ;;  %2321 = vmatpush3.msra.mxu1 %v393_v26 }
 0x13d   :  { %2293 = vmatmul.mubr.f32.vlgmr.msra.gmra.mxu0 %v387_v13  ;;  %2330 = vmatprep.subr.mxu1 %v2691_v0 }
 0x13e   :  { %2296 = vmatpush3.xpose.msra.mxu0 %v278_v63  ;;  %2297 = vmatprep.mubr.msk.f32.mxu0 %vm2692_vm0, %v2691_v0 }
 0x13f   :  { %2300 = vmatprep.subr.mxu0 %v2691_v0 }
 0x141   :  { %2298 = vmatmul.mubr.f32.vlgmr.msra.gmra.mxu0 %v388_v16 }
 0x142   :  { %2301 = vmatpush3.xpose.msra.mxu0 %v284_v8  ;;  %2302 = vmatprep.mubr.msk.f32.mxu0 %vm2692_vm0, %v2691_v0 }
 0x143   :  { %2305 = vmatprep.subr.mxu0 %v2691_v0 }
 0x145   :  { %2303 = vmatmul.mubr.f32.vlgmr.msra.gmra.mxu0 %v389_v17 }
 0x146   :  { %2306 = vmatpush3.xpose.msra.mxu0 %v284_v8  ;;  %2307 = vmatprep.mubr.msk.f32.mxu0 %vm2692_vm0, %v2691_v0 }
 0x147   :  { %2315 = vmatprep.subr.mxu0 %v2691_v0 }
 0x149   :  { %2308 = vmatmul.mubr.f32.vlgmr.msra.gmra.mxu0 %v390_v18 }
 0x14a   :  { %2316 = vmatpush3.xpose.msra.mxu0 %v284_v8  ;;  %2317 = vmatprep.mubr.msk.f32.mxu0 %vm2692_vm0, %v2691_v0 }
 0x14b   :  { %2325 = vmatprep.subr.mxu0 %v2691_v0 }
 0x14d   :  { %2318 = vmatmul.mubr.f32.vlgmr.msra.gmra.mxu0 %v392_v19 }
 0x14e   :  { %2327 = vmatprep.mubr.msk.f32.mxu0 %vm2692_vm0, %v2691_v0  ;;  %2326 = vmatpush3.msra.mxu0 %v394_v27 }
 0x14f   :  { %2335 = vmatprep.subr.mxu0 %v2691_v0 }
 0x1f5   :  { %v467_v28 = vpop.f32.mrf.mxu0 }
 0x1f6   :  { %v962_v29 = vsel %vm961_vm1, %v467_v28, -inf }
 0x1f7   :  { %963 = vmax.xlane.f32.xlu0 %v962_v29  ;;  %v2284_v30 = vpop.f32.mrf.mxu0 }
 0x1f9   :  { %v537_v31 = vpop.f32.mrf.mxu0 }
 0x1fa   :  { %v965_v32 = vsel %vm961_vm1, %v537_v31, -inf }
 0x1fb   :  { %966 = vmax.xlane.f32.xlu0 %v965_v32  ;;  %v2289_v33 = vpop.f32.mrf.mxu0  ;;  %v887_v34 = vpop.f32.mrf.mxu1 }
 0x1fc   :  { %v980_v47 = vsel %vm961_vm1, %v887_v34, -inf }
 0x1fd   :  { %v607_v35 = vpop.f32.mrf.mxu0  ;;  %v2314_v36 = vpop.f32.mrf.mxu1 }
 0x1fe   :  { %v968_v37 = vsel %vm961_vm1, %v607_v35, -inf }
 0x1ff   :  { %969 = vmax.xlane.f32.xlu1 %v968_v37  ;;  %v2294_v38 = vpop.f32.mrf.mxu0 }
 0x201   :  { %v677_v39 = vpop.f32.mrf.mxu0 }
 0x202   :  { %v971_v40 = vsel %vm961_vm1, %v677_v39, -inf }
 0x203   :  { %972 = vmax.xlane.f32.xlu1 %v971_v40  ;;  %v2299_v42 = vpop.f32.mrf.mxu0 }
 0x205   :  { %v747_v43 = vpop.f32.mrf.mxu0 }
 0x206   :  { %v974_v44 = vsel %vm961_vm1, %v747_v43, -inf }
 0x207   :  { %975 = vmax.xlane.f32.xlu0 %v974_v44  ;;  %v2304_v45 = vpop.f32.mrf.mxu0 }
 0x209   :  { %v817_v46 = vpop.f32.mrf.mxu0 }
 0x20a   :  { %v977_v48 = vsel %vm961_vm1, %v817_v46, -inf }
 0x20b   :  { %981 = vmax.xlane.f32.xlu0 %v980_v47  ;;  %978 = vmax.xlane.f32.xlu1 %v977_v48  ;;  %v2309_v49 = vpop.f32.mrf.mxu0 }
 0x20d   :  { %v957_v50 = vpop.f32.mrf.mxu0 }
 0x20e   :  { %v983_v51 = vsel %vm961_vm1, %v957_v50, -inf }
 0x20f   :  { %984 = vmax.xlane.f32.xlu1 %v983_v51  ;;  %v2319_v52 = vpop.f32.mrf.mxu0 }
 0x280   :  { %v964_v54 = vpop.xlane.xlu0 %963 }
 0x281   :  { %v986_v55 = vsub.f32 %v467_v28, %v964_v54 }
 0x283   :  { %v994_v56 = vmul.f32 1.442695, %v986_v55 }
 0x284   :  { %v967_v58 = vpop.xlane.xlu0 %966 }
 0x285   :  { %2481 = vpow2.f32 %v994_v56  ;;  %v987_v59 = vsub.f32 %v537_v31, %v967_v58 }
 0x287   :  { %v996_v60 = vmul.f32 1.442695, %v987_v59 }
 0x288   :  { %v970_v62 = vpop.xlane.xlu1 %969 }
 0x289   :  { %2483 = vpow2.f32 %v996_v60  ;;  %v988_v63 = vsub.f32 %v607_v35, %v970_v62  ;;  %v395_v62 = vmul.f32 %v2844_v9, %v2885_v25 }
 0x28b   :  { %v998_v2 = vmul.f32 1.442695, %v988_v63 }
 0x28c   :  { %v973_v4 = vpop.xlane.xlu1 %972 }
 0x28d   :  { %2485 = vpow2.f32 %v998_v2  ;;  %v989_v6 = vsub.f32 %v677_v39, %v973_v4 }
 0x28f   :  { %v1000_v7 = vmul.f32 1.442695, %v989_v6 }
 0x290   :  { %v976_v8 = vpop.xlane.xlu0 %975 }
 0x291   :  { %2487 = vpow2.f32 %v1000_v7  ;;  %v990_v10 = vsub.f32 %v747_v43, %v976_v8 }
 0x292   :  { %v2482_v11 = vpop.eup %2481 }
 0x293   :  { %v1002_v13 = vmul.f32 1.442695, %v990_v10  ;;  %v1010_v16 = vsel %vm961_vm1, %v2482_v11, 0.0  ;;  %v396_v10 = vmul.f32 %v2860_v15, %v2885_v25 }
 0x294   :  { %1011 = vadd.xlane.f32.xlu0 %v1010_v16  ;;  %v982_v17 = vpop.xlane.xlu0 %981  ;;  %v979_v18 = vpop.xlane.xlu1 %978 }
 0x295   :  { %2489 = vpow2.f32 %v1002_v13  ;;  %v992_v19 = vsub.f32 %v887_v34, %v982_v17  ;;  %v991_v20 = vsub.f32 %v817_v46, %v979_v18 }
 0x296   :  { %v2484_v21 = vpop.eup %2483 }
 0x297   :  { %v1006_v22 = vmul.f32 1.442695, %v992_v19  ;;  %v1004_v24 = vmul.f32 1.442695, %v991_v20  ;;  %v1013_v26 = vsel %vm961_vm1, %v2484_v21, 0.0  ;;  %v397_v19 = vmul.f32 %v2830_v61, %v2883_v23 }
 0x298   :  { %1014 = vadd.xlane.f32.xlu1 %v1013_v26  ;;  %v985_v27 = vpop.xlane.xlu1 %984  ;;  %v398_v26 = vmul.f32 %v2840_v5, %v2883_v23  ;;  %v1679_v5 = vld [vmem:[#allocation8 + $0x78] sm:$0xff] }
 0x299   :  { %2491 = vpow2.f32 %v1006_v22  ;;  %v993_v28 = vsub.f32 %v957_v50, %v985_v27 }
 0x29a   :  { %v2486_v29 = vpop.eup %2485  ;;  %2493 = vpow2.f32 %v1004_v24 }
 0x29b   :  { %v1008_v30 = vmul.f32 1.442695, %v993_v28  ;;  %v1016_v31 = vsel %vm961_vm1, %v2486_v29, 0.0 }
 0x29c   :  { %1017 = vadd.xlane.f32.xlu0 %v1016_v31 }
 0x29d   :  { %2495 = vpow2.f32 %v1008_v30 }
 0x29e   :  { %v2904_v32 = vpop.eup %2487 }
 0x29f   :  { %v1019_v33 = vsel %vm961_vm1, %v2904_v32, 0.0 }
 0x2a0   :  { %1020 = vadd.xlane.f32.xlu1 %v1019_v33  ;;  %v399_v33 = vmul.f32 %v2844_v9, %v2883_v23  ;;  %v400_v9 = vmul.f32 %v2860_v15, %v2883_v23  ;;  %v1675_v15 = vld [vmem:[#allocation8 + $0x58] sm:$0xff]  ;;  %v1674_v23 = vld [vmem:[#allocation8 + $0x50] sm:$0xff] }
 0x2a2   :  { %v2908_v34 = vpop.eup %2489 }
 0x2a3   :  { %v1022_v35 = vsel %vm961_vm1, %v2908_v34, 0.0 }
 0x2a4   :  { %1023 = vadd.xlane.f32.xlu0 %v1022_v35 }
 0x2a6   :  { %v2912_v36 = vpop.eup %2491 }
 0x2a7   :  { %v2914_v37 = vpop.eup %2493  ;;  %v1028_v38 = vsel %vm961_vm1, %v2912_v36, 0.0 }
 0x2a8   :  { %1029 = vadd.xlane.f32.xlu0 %v1028_v38  ;;  %v1025_v39 = vsel %vm961_vm1, %v2914_v37, 0.0 }
 0x2a9   :  { %1026 = vadd.xlane.f32.xlu1 %v1025_v39 }
 0x2aa   :  { %v2920_v40 = vpop.eup %2495 }
 0x2ab   :  { %v1031_v42 = vsel %vm961_vm1, %v2920_v40, 0.0 }
 0x2ad   :  { %1032 = vadd.xlane.f32.xlu1 %v1031_v42 }
 0x31d   :  { %v1012_v43 = vpop.xlane.xlu0 %1011 }
 0x31e   :  { %2497 = vrcp.f32 %v1012_v43 }
 0x321   :  { %v1015_v44 = vpop.xlane.xlu1 %1014 }
 0x322   :  { %2499 = vrcp.f32 %v1015_v44 }
 0x325   :  { %v1018_v45 = vpop.xlane.xlu0 %1017 }
 0x326   :  { %2501 = vrcp.f32 %v1018_v45 }
 0x329   :  { %v1021_v46 = vpop.xlane.xlu1 %1020 }
 0x32a   :  { %2503 = vrcp.f32 %v1021_v46 }
 0x32b   :  { %v2498_v47 = vpop.eup %2497 }
 0x32c   :  { %v1042_v48 = vmul.f32 %v2498_v47, %v1012_v43 }
 0x32d   :  { %v1024_v49 = vpop.xlane.xlu0 %1023 }
 0x32e   :  { %v1050_v50 = vsub.f32 2.0, %v1042_v48  ;;  %2505 = vrcp.f32 %v1024_v49  ;;  %v1673_v48 = vld [vmem:[#allocation8 + $0x48] sm:$0xff] }
 0x32f   :  { %v2500_v51 = vpop.eup %2499 }
 0x330   :  { %v1058_v52 = vmul.f32 %v2498_v47, %v1050_v50  ;;  %v1043_v54 = vmul.f32 %v2500_v51, %v1015_v44  ;;  %v1677_v47 = vld [vmem:[#allocation8 + $0x68] sm:$0xff] }
 0x331   :  { %v1030_v55 = vpop.xlane.xlu0 %1029  ;;  %v1669_v50 = vld [vmem:[#allocation8 + $0x28] sm:$0xff] }
 0x332   :  { %v1066_v56 = vmul.f32 %v2482_v11, %v1058_v52  ;;  %v1051_v58 = vsub.f32 2.0, %v1043_v54  ;;  %2507 = vrcp.f32 %v1030_v55  ;;  %v1027_v59 = vpop.xlane.xlu1 %1026  ;;  %v1667_v52 = vld [vmem:[#allocation8 + $0x18] sm:$0xff]  ;;  %v1666_v54 = vld [vmem:[#allocation8 + $0x10] sm:$0xff] }
 0x333   :  { %v2502_v60 = vpop.eup %2501  ;;  %2509 = vrcp.f32 %v1027_v59 }
 0x334   :  { %v1059_v63 = vmul.f32 %v2500_v51, %v1051_v58  ;;  %v1044_v2 = vmul.f32 %v2502_v60, %v1018_v45  ;;  %2323 = vmatmul.mubr.msk.f32.vlgmr.msra.gmra.mxu1 %vm961_vm1, %v1066_v56  ;;  %v1678_v45 = vld [vmem:[#allocation8 + $0x70] sm:$0xff]  ;;  %v1668_v51 = vld [vmem:[#allocation8 + $0x20] sm:$0xff] }
 0x335   :  { %2331 = vmatpush3.msra.mxu1 %v395_v62  ;;  %2332 = vmatprep.mubr.msk.f32.mxu1 %vm2692_vm0, %v2691_v0  ;;  %v1664_v56 = vld [vmem:[#allocation8] sm:$0xff] }
 0x336   :  { %v1067_v4 = vmul.f32 %v2484_v21, %v1059_v63  ;;  %v1052_v6 = vsub.f32 2.0, %v1044_v2  ;;  %v1033_v7 = vpop.xlane.xlu1 %1032  ;;  %2340 = vmatprep.subr.mxu1 %v2691_v0 }
 0x337   :  { %v2504_v8 = vpop.eup %2503  ;;  %2511 = vrcp.f32 %v1033_v7 }
 0x338   :  { %v1060_v11 = vmul.f32 %v2502_v60, %v1052_v6  ;;  %v1045_v13 = vmul.f32 %v2504_v8, %v1021_v46  ;;  %2328 = vmatmul.mubr.msk.f32.vlgmr.msra.gmra.mxu0 %vm961_vm1, %v1067_v4 }
 0x339   :  { %2336 = vmatpush3.msra.mxu0 %v396_v10  ;;  %2337 = vmatprep.mubr.msk.f32.mxu0 %vm2692_vm0, %v2691_v0 }
 0x33a   :  { %v1068_v16 = vmul.f32 %v2486_v29, %v1060_v11  ;;  %v1053_v17 = vsub.f32 2.0, %v1045_v13  ;;  %2345 = vmatprep.subr.mxu0 %v2691_v0 }
 0x33b   :  { %v2506_v18 = vpop.eup %2505 }
 0x33c   :  { %v1061_v20 = vmul.f32 %v2504_v8, %v1053_v17  ;;  %v1046_v21 = vmul.f32 %v2506_v18, %v1024_v49  ;;  %2333 = vmatmul.mubr.msk.f32.vlgmr.msra.gmra.mxu1 %vm961_vm1, %v1068_v16  ;;  %v1670_v49 = vld [vmem:[#allocation8 + $0x30] sm:$0xff] }
 0x33d   :  { %2341 = vmatpush3.msra.mxu1 %v397_v19  ;;  %2342 = vmatprep.mubr.msk.f32.mxu1 %vm2692_vm0, %v2691_v0 }
 0x33e   :  { %v1069_v25 = vmul.f32 %v2904_v32, %v1061_v20  ;;  %v1054_v22 = vsub.f32 2.0, %v1046_v21  ;;  %2350 = vmatprep.subr.mxu1 %v2691_v0 }
 0x33f   :  { %v2508_v24 = vpop.eup %2507 }
 0x340   :  { %v2510_v27 = vpop.eup %2509  ;;  %v1062_v28 = vmul.f32 %v2506_v18, %v1054_v22  ;;  %v1048_v61 = vmul.f32 %v2508_v24, %v1030_v55  ;;  %2338 = vmatmul.mubr.msk.f32.vlgmr.msra.gmra.mxu0 %vm961_vm1, %v1069_v25  ;;  %v1665_v55 = vld [vmem:[#allocation8 + $0x8] sm:$0xff] }
 0x341   :  { %v1047_v29 = vmul.f32 %v2510_v27, %v1027_v59  ;;  %2346 = vmatpush3.msra.mxu0 %v398_v26  ;;  %2347 = vmatprep.mubr.msk.f32.mxu0 %vm2692_vm0, %v2691_v0  ;;  %v2134_v26 = vld [vmem:[%s3018_s5] ss:$0 sm:$0xff] }
 0x342   :  { %v1070_v30 = vmul.f32 %v2908_v34, %v1062_v28  ;;  %v1056_v31 = vsub.f32 2.0, %v1048_v61  ;;  %2355 = vmatprep.subr.mxu0 %v2691_v0 }
 0x343   :  { %v1055_v32 = vsub.f32 2.0, %v1047_v29 }
 0x344   :  { %v2512_v35 = vpop.eup %2511  ;;  %v1064_v38 = vmul.f32 %v2508_v24, %v1056_v31  ;;  %2343 = vmatmul.mubr.msk.f32.vlgmr.msra.gmra.mxu1 %vm961_vm1, %v1070_v30 }
 0x345   :  { %v1063_v39 = vmul.f32 %v2510_v27, %v1055_v32  ;;  %v1049_v42 = vmul.f32 %v2512_v35, %v1033_v7  ;;  %2351 = vmatpush3.msra.mxu1 %v399_v33  ;;  %2352 = vmatprep.mubr.msk.f32.mxu1 %vm2692_vm0, %v2691_v0  ;;  %v1825_v32 = vld [vmem:[#allocation10 + $0x78] sm:$0xff]  ;;  %v1824_v33 = vld [vmem:[#allocation10 + $0x70] sm:$0xff] }
 0x346   :  { %v1072_v34 = vmul.f32 %v2912_v36, %v1064_v38  ;;  %2360 = vmatprep.subr.mxu1 %v1679_v5  ;;  %v138_v38 = vsel %vm136_vm2, %v2832_v1, 0.0 }
 0x347   :  { %v1071_v43 = vmul.f32 %v2914_v37, %v1063_v39  ;;  %v1057_v44 = vsub.f32 2.0, %v1049_v42  ;;  %v1676_v37 = vld [vmem:[#allocation8 + $0x60] sm:$0xff] }
 0x348   :  { %2353 = vmatmul.mubr.msk.f32.vlgmr.msra.gmra.mxu1 %vm961_vm1, %v1072_v34 }
 0x349   :  { %v1065_v46 = vmul.f32 %v2512_v35, %v1057_v44  ;;  %2348 = vmatmul.mubr.msk.f32.vlgmr.msra.gmra.mxu0 %vm961_vm1, %v1071_v43  ;;  %2361 = vmatpush3.msra.mxu1 %v1679_v5  ;;  %v1823_v5 = vld [vmem:[#allocation10 + $0x68] sm:$0xff]  ;;  %v137_v35 = vsel %vm136_vm2, %v2826_v57, 0.0 }
 0x34a   :  { %2356 = vmatpush3.msra.mxu0 %v400_v9  ;;  %2357 = vmatprep.mubr.msk.f32.mxu0 %vm2692_vm0, %v2691_v0  ;;  %v1672_v0 = vld [vmem:[#allocation8 + $0x40] sm:$0xff]  ;;  %v139_v39 = vadd.f32 %v138_v38, %v137_v35 }
 0x34b   :  { %v1073_v36 = vmul.f32 %v2920_v40, %v1065_v46  ;;  %2362 = vmatprep.subr.mxu1 %v1678_v45  ;;  %v1671_v40 = vld [vmem:[#allocation8 + $0x38] sm:$0xff]  ;;  %2395 = vmatprep.subr.mxu0 %v1825_v32 }
 0x34c   :  { %2363 = vmatpush3.msra.mxu1 %v1678_v45 }
 0x34d   :  { %2358 = vmatmul.mubr.msk.f32.vlgmr.msra.gmra.mxu0 %vm961_vm1, %v1073_v36  ;;  %2364 = vmatprep.subr.mxu1 %v1677_v47 }
 0x34e   :  { %2365 = vmatpush3.msra.mxu1 %v1677_v47  ;;  %2396 = vmatpush3.msra.mxu0 %v1825_v32  ;;  %v1963_v32 = vld [vmem:[#allocation11 + $0x8] sm:$0xff] }
 0x34f   :  { %2366 = vmatprep.subr.mxu1 %v1676_v37  ;;  %2397 = vmatprep.subr.mxu0 %v1824_v33 }
 0x350   :  { %2367 = vmatpush3.msra.mxu1 %v1676_v37  ;;  %2398 = vmatpush3.msra.mxu0 %v1824_v33  ;;  %v1962_v33 = vld [vmem:[#allocation11] sm:$0xff] }
 0x351   :  { %2368 = vmatprep.subr.mxu1 %v1675_v15  ;;  %2399 = vmatprep.subr.mxu0 %v1823_v5 }
 0x352   :  { %2369 = vmatpush3.msra.mxu1 %v1675_v15  ;;  %2400 = vmatpush3.msra.mxu0 %v1823_v5  ;;  %v1822_v15 = vld [vmem:[#allocation10 + $0x60] sm:$0xff]  ;;  %v2137_v5 = vld [vmem:[%s3022_s9] ss:$0 sm:$0xff] }
 0x353   :  { %2370 = vmatprep.subr.mxu1 %v1674_v23  ;;  %2401 = vmatprep.subr.mxu0 %v1822_v15 }
 0x354   :  { %2371 = vmatpush3.msra.mxu1 %v1674_v23  ;;  %2402 = vmatpush3.msra.mxu0 %v1822_v15  ;;  %v1820_v23 = vld [vmem:[#allocation10 + $0x50] sm:$0xff] }
 0x355   :  { %2372 = vmatprep.subr.mxu1 %v1673_v48 }
 0x356   :  { %2373 = vmatpush3.msra.mxu1 %v1673_v48  ;;  %v1819_v48 = vld [vmem:[#allocation10 + $0x48] sm:$0xff] }
 0x357   :  { %2374 = vmatprep.subr.mxu1 %v1672_v0 }
 0x358   :  { %2375 = vmatpush3.msra.mxu1 %v1672_v0  ;;  %v1817_v0 = vld [vmem:[#allocation10 + $0x38] sm:$0xff] }
 0x359   :  { %2376 = vmatprep.subr.mxu1 %v1671_v40 }
 0x35a   :  { %2377 = vmatpush3.msra.mxu1 %v1671_v40  ;;  %v1816_v40 = vld [vmem:[#allocation10 + $0x30] sm:$0xff] }
 0x35b   :  { %2378 = vmatprep.subr.mxu1 %v1670_v49 }
 0x35c   :  { %2379 = vmatpush3.msra.mxu1 %v1670_v49  ;;  %v1815_v49 = vld [vmem:[#allocation10 + $0x28] sm:$0xff] }
 0x35d   :  { %2380 = vmatprep.subr.mxu1 %v1669_v50 }
 0x35e   :  { %2381 = vmatpush3.msra.mxu1 %v1669_v50  ;;  %v1814_v50 = vld [vmem:[#allocation10 + $0x20] sm:$0xff] }
 0x35f   :  { %2382 = vmatprep.subr.mxu1 %v1668_v51 }
 0x360   :  { %2383 = vmatpush3.msra.mxu1 %v1668_v51  ;;  %v1813_v51 = vld [vmem:[#allocation10 + $0x18] sm:$0xff] }
 0x361   :  { %2384 = vmatprep.subr.mxu1 %v1667_v52 }
 0x362   :  { %2385 = vmatpush3.msra.mxu1 %v1667_v52  ;;  %v1812_v52 = vld [vmem:[#allocation10 + $0x10] sm:$0xff] }
 0x363   :  { %2386 = vmatprep.subr.mxu1 %v1666_v54 }
 0x364   :  { %2387 = vmatpush3.msra.mxu1 %v1666_v54  ;;  %v1811_v54 = vld [vmem:[#allocation10 + $0x8] sm:$0xff] }
 0x365   :  { %2388 = vmatprep.subr.mxu1 %v1665_v55 }
 0x366   :  { %2389 = vmatpush3.msra.mxu1 %v1665_v55  ;;  %v1810_v55 = vld [vmem:[#allocation10] sm:$0xff] }
 0x367   :  { %2390 = vmatprep.subr.mxu1 %v1664_v56 }
 0x368   :  { %2391 = vmatpush3.msra.mxu1 %v1664_v56 }
 0x3f4   :  { %v1143_v58 = vpop.f32.mrf.mxu1 }
 0x3f6   :  { %v2324_v59 = vpop.f32.mrf.mxu1 }
 0x3f8   :  { %v1216_v60 = vpop.f32.mrf.mxu0 }
 0x3f9   :  { %v1658_v2 = vadd.f32 %v1216_v60, %v1143_v58 }
 0x3fa   :  { %v2329_v62 = vpop.f32.mrf.mxu0 }
 0x3fc   :  { %v1289_v63 = vpop.f32.mrf.mxu1 }
 0x3fd   :  { %v1659_v6 = vadd.f32 %v1658_v2, %v1289_v63 }
 0x3fe   :  { %v2334_v4 = vpop.f32.mrf.mxu1 }
 0x3ff   :  { %v2135_v4 = vld [vmem:[%s3019_s6] ss:$0 sm:$0xff] }
 0x400   :  { %v1362_v7 = vpop.f32.mrf.mxu0 }
 0x401   :  { %v1660_v8 = vadd.f32 %v1659_v6, %v1362_v7 }
 0x402   :  { %v2339_v10 = vpop.f32.mrf.mxu0 }
 0x403   :  { %2392 = vmatprep.mubr.f32.mxu1 %v1660_v8 }
 0x404   :  { %v1435_v11 = vpop.f32.mrf.mxu1 }
 0x406   :  { %v2344_v13 = vpop.f32.mrf.mxu1 }
 0x408   :  { %v1581_v16 = vpop.f32.mrf.mxu1 }
 0x409   :  { %v1508_v17 = vpop.f32.mrf.mxu0 }
 0x40a   :  { %v1661_v18 = vadd.f32 %v1508_v17, %v1435_v11  ;;  %v2354_v19 = vpop.f32.mrf.mxu1  ;;  %v2136_v11 = vld [vmem:[%s3020_s7] ss:$0 sm:$0xff] }
 0x40b   :  { %v2349_v20 = vpop.f32.mrf.mxu0  ;;  %v1976_v19 = vld [vmem:[#allocation11 + $0x70] sm:$0xff] }
 0x40c   :  { %v1662_v21 = vadd.f32 %v1661_v18, %v1581_v16  ;;  %v1977_v18 = vld [vmem:[#allocation11 + $0x78] sm:$0xff]  ;;  %v1975_v20 = vld [vmem:[#allocation11 + $0x68] sm:$0xff] }
 0x40d   :  { %v1654_v25 = vpop.f32.mrf.mxu0  ;;  %2430 = vmatprep.subr.mxu1 %v1977_v18 }
 0x40e   :  { %v1663_v22 = vadd.f32 %v1662_v21, %v1654_v25  ;;  %v1974_v21 = vld [vmem:[#allocation11 + $0x60] sm:$0xff]  ;;  %v1973_v25 = vld [vmem:[#allocation11 + $0x58] sm:$0xff] }
 0x40f   :  { %v2359_v24 = vpop.f32.mrf.mxu0 }
 0x410   :  { %2393 = vmatmul.mubr.f32.vlgmr.msra.gmra.mxu1 %v1663_v22  ;;  %v1972_v22 = vld [vmem:[#allocation11 + $0x50] sm:$0xff]  ;;  %v1971_v24 = vld [vmem:[#allocation11 + $0x48] sm:$0xff] }
 0x411   :  { %2431 = vmatpush3.msra.mxu1 %v1977_v18 }
 0x412   :  { %2432 = vmatprep.subr.mxu1 %v1976_v19 }
 0x413   :  { %2433 = vmatpush3.msra.mxu1 %v1976_v19 }
 0x414   :  { %2434 = vmatprep.subr.mxu1 %v1975_v20 }
 0x415   :  { %2435 = vmatpush3.msra.mxu1 %v1975_v20 }
 0x416   :  { %2436 = vmatprep.subr.mxu1 %v1974_v21 }
 0x417   :  { %2437 = vmatpush3.msra.mxu1 %v1974_v21 }
 0x418   :  { %2438 = vmatprep.subr.mxu1 %v1973_v25 }
 0x419   :  { %2439 = vmatpush3.msra.mxu1 %v1973_v25 }
 0x41a   :  { %2440 = vmatprep.subr.mxu1 %v1972_v22 }
 0x41b   :  { %2441 = vmatpush3.msra.mxu1 %v1972_v22 }
 0x41c   :  { %2442 = vmatprep.subr.mxu1 %v1971_v24 }
 0x41d   :  { %2443 = vmatpush3.msra.mxu1 %v1971_v24 }
 0x4d0   :  { %v2394_v27 = vpop.f32.mrf.mxu1 }
 0x4d1   :  { %v1759_v28 = vadd.f32 %v2394_v27, %v2134_v26  ;;  %v1969_v27 = vld [vmem:[#allocation11 + $0x38] sm:$0xff] }
 0x4d2   :  { %v1753_v61 = vpop.f32.mrf.mxu1 }
 0x4d3   :  { %v1754_v29 = vadd.f32 %v2134_v26, %v1753_v61  ;;  %v1763_v30 = vadd.f32 %v1759_v28, %v2807_v41  ;;  %v140_v41 = vsel %vm136_vm2, %v2834_v3, 0.0  ;;  %v1970_v26 = vld [vmem:[#allocation11 + $0x40] sm:$0xff]  ;;  %v1968_v28 = vld [vmem:[#allocation11 + $0x30] sm:$0xff]  ;;  %v1967_v61 = vld [vmem:[#allocation11 + $0x28] sm:$0xff] }
 0x4d4   :  { %v141_v42 = vadd.f32 %v140_v41, %v139_v39  ;;  %2444 = vmatprep.subr.mxu1 %v1970_v26 }
 0x4d5   :  { %1768 = vadd.xlane.f32.xlu1 %v1763_v30  ;;  %v1762_v31 = vadd.f32 %v1754_v29, %v2801_v14  ;;  %v142_v14 = vsel %vm136_vm2, %v2851_v12, 0.0  ;;  %v1821_v12 = vld [vmem:[#allocation10 + $0x58] sm:$0xff]  ;;  %2445 = vmatpush3.msra.mxu1 %v1970_v26  ;;  %v1966_v29 = vld [vmem:[#allocation11 + $0x20] sm:$0xff] }
 0x4d6   :  { %v143_v34 = vadd.f32 %v142_v14, %v141_v42  ;;  %2403 = vmatprep.subr.mxu0 %v1821_v12  ;;  %2446 = vmatprep.subr.mxu1 %v1969_v27 }
 0x4d7   :  { %1766 = vadd.xlane.f32.xlu0 %v1762_v31  ;;  %2404 = vmatpush3.msra.mxu0 %v1821_v12 }
 0x4d8   :  { %v2975_v47 = vrot.slane %v143_v34, %v2819_v53  ;;  %2405 = vmatprep.subr.mxu0 %v1820_v23  ;;  %v1818_v53 = vld [vmem:[#allocation10 + $0x40] sm:$0xff]  ;;  %2447 = vmatpush3.msra.mxu1 %v1969_v27 }
 0x4d9   :  { %2406 = vmatpush3.msra.mxu0 %v1820_v23  ;;  %2448 = vmatprep.subr.mxu1 %v1968_v28 }
 0x4da   :  { %2407 = vmatprep.subr.mxu0 %v1819_v48  ;;  %2449 = vmatpush3.msra.mxu1 %v1968_v28 }
 0x4db   :  { %2408 = vmatpush3.msra.mxu0 %v1819_v48  ;;  %2450 = vmatprep.subr.mxu1 %v1967_v61 }
 0x4dc   :  { %2409 = vmatprep.subr.mxu0 %v1818_v53  ;;  %2451 = vmatpush3.msra.mxu1 %v1967_v61 }
 0x4dd   :  { %2410 = vmatpush3.msra.mxu0 %v1818_v53  ;;  %2452 = vmatprep.subr.mxu1 %v1966_v29 }
 0x4de   :  { %2411 = vmatprep.subr.mxu0 %v1817_v0  ;;  %2453 = vmatpush3.msra.mxu1 %v1966_v29  ;;  %v2138_v29 = vld [vmem:[%s3024_s11] ss:$0 sm:$0xff] }
 0x4df   :  { %2412 = vmatpush3.msra.mxu0 %v1817_v0 }
 0x4e0   :  { %2413 = vmatprep.subr.mxu0 %v1816_v40 }
 0x4e1   :  { %2414 = vmatpush3.msra.mxu0 %v1816_v40 }
 0x4e2   :  { %2415 = vmatprep.subr.mxu0 %v1815_v49 }
 0x4e3   :  { %2416 = vmatpush3.msra.mxu0 %v1815_v49 }
 0x4e4   :  { %2417 = vmatprep.subr.mxu0 %v1814_v50 }
 0x4e5   :  { %2418 = vmatpush3.msra.mxu0 %v1814_v50 }
 0x4e6   :  { %2419 = vmatprep.subr.mxu0 %v1813_v51 }
 0x4e7   :  { %2420 = vmatpush3.msra.mxu0 %v1813_v51 }
 0x4e8   :  { %2421 = vmatprep.subr.mxu0 %v1812_v52 }
 0x4e9   :  { %2422 = vmatpush3.msra.mxu0 %v1812_v52 }
 0x4ea   :  { %2423 = vmatprep.subr.mxu0 %v1811_v54 }
 0x4eb   :  { %2424 = vmatpush3.msra.mxu0 %v1811_v54 }
 0x4ec   :  { %2425 = vmatprep.subr.mxu0 %v1810_v55 }
 0x4ed   :  { %2426 = vmatpush3.msra.mxu0 %v1810_v55 }
 0x55e   :  { %v1769_v43 = vpop.xlane.xlu1 %1768 }
 0x55f   :  { %v1771_v44 = vmul.f32 0.03125, %v1769_v43 }
 0x560   :  { %v1767_v9 = vpop.xlane.xlu0 %1766 }
 0x561   :  { %v1773_v45 = vsub.f32 %v1763_v30, %v1771_v44  ;;  %v1770_v46 = vmul.f32 0.03125, %v1767_v9  ;;  %v1965_v30 = vld [vmem:[#allocation11 + $0x18] sm:$0xff] }
 0x562   :  { %2454 = vmatprep.subr.mxu1 %v1965_v30 }
 0x563   :  { %v1772_v36 = vsub.f32 %v1762_v31, %v1770_v46  ;;  %v1775_v37 = vmul.f32 %v1773_v45, %v1773_v45  ;;  %2455 = vmatpush3.msra.mxu1 %v1965_v30  ;;  %v1964_v31 = vld [vmem:[#allocation11 + $0x10] sm:$0xff] }
 0x564   :  { %2456 = vmatprep.subr.mxu1 %v1964_v31 }
 0x565   :  { %v1781_v57 = vmul.f32 %v2975_v47, %v1775_v37  ;;  %v1774_v1 = vmul.f32 %v1772_v36, %v1772_v36  ;;  %2457 = vmatpush3.msra.mxu1 %v1964_v31 }
 0x566   :  { %2458 = vmatprep.subr.mxu1 %v1963_v32 }
 0x567   :  { %1784 = vadd.xlane.f32.xlu1 %v1781_v57  ;;  %v1780_v3 = vmul.f32 %v2975_v47, %v1774_v1  ;;  %2459 = vmatpush3.msra.mxu1 %v1963_v32 }
 0x568   :  { %2460 = vmatprep.subr.mxu1 %v1962_v33 }
 0x569   :  { %1782 = vadd.xlane.f32.xlu0 %v1780_v3  ;;  %2461 = vmatpush3.msra.mxu1 %v1962_v33 }
 0x5f0   :  { %v1785_v56 = vpop.xlane.xlu1 %1784 }
 0x5f1   :  { %v1787_v58 = vmul.f32 0.03125, %v1785_v56 }
 0x5f2   :  { %v1783_v59 = vpop.xlane.xlu0 %1782 }
 0x5f3   :  { %v1789_v60 = vadd.f32 1e-05, %v1787_v58  ;;  %v1786_v62 = vmul.f32 0.03125, %v1783_v59 }
 0x5f5   :  { %2513 = vrsqrt.f32 %v1789_v60  ;;  %v1788_v63 = vadd.f32 1e-05, %v1786_v62 }
 0x5f7   :  { %2515 = vrsqrt.f32 %v1788_v63 }
 0x602   :  { %v2514_v2 = vpop.eup %2513 }
 0x603   :  { %v1793_v6 = vmul.f32 %v2514_v2, %v1773_v45 }
 0x604   :  { %v2516_v7 = vpop.eup %2515 }
 0x605   :  { %v1792_v8 = vmul.f32 %v2516_v7, %v1772_v36  ;;  %v1801_v10 = vmul.f32 %v2135_v4, %v1793_v6 }
 0x607   :  { %v1800_v13 = vmul.f32 %v2135_v4, %v1792_v8  ;;  %v2987_v17 = vadd.f32 %v2136_v11, %v1801_v10 }
 0x609   :  { %v2985_v16 = vadd.f32 %v2136_v11, %v1800_v13  ;;  %v2693_v11 = vmov -1.0  }
 0x60b   :  { %2427 = vmatprep.mubr.f32.mxu0 %v2985_v16 }
 0x60c   :  { %2428 = vmatmul.mubr.f32.vlgmr.msra.gmra.mxu0 %v2987_v17 }
 0x6cc   :  { %v2429_v35 = vpop.f32.mrf.mxu0 }
 0x6cd   :  { %v1905_v38 = vadd.f32 %v2429_v35, %v2137_v5 }
 0x6ce   :  { %v1899_v39 = vpop.f32.mrf.mxu0 }
 0x6cf   :  { %v1911_v41 = vmul.f32 0.70710677, %v1905_v38  ;;  %v1900_v42 = vadd.f32 %v2137_v5, %v1899_v39  ;;  %v1909_v27 = vmul.f32 0.5, %v1905_v38 }
 0x6d1   :  { %v1917_v14 = vand.u32 2147483647, %v1911_v41  ;;  %v1910_v34 = vmul.f32 0.70710677, %v1900_v42  ;;  %vm1913_vm3 = vcmp.ge.f32.partialorder %v1911_v41, 0.0  ;;  %v1908_v24 = vmul.f32 0.5, %v1900_v42 }
 0x6d2   :  { %v1915_v13 = vsel %vm1913_vm3, 1.0, %v2693_v11 }
 0x6d3   :  { %v1919_v43 = vmul.f32 0.3275911, %v1917_v14  ;;  %v1916_v44 = vand.u32 2147483647, %v1910_v34  ;;  %v1945_v36 = vsub.f32 0.0, %v1917_v14  ;;  %vm1912_vm4 = vcmp.ge.f32.partialorder %v1910_v34, 0.0 }
 0x6d4   :  { %v1914_v21 = vsel %vm1912_vm4, 1.0, %v2693_v11 }
 0x6d5   :  { %v1921_v9 = vadd.f32 1.0, %v1919_v43  ;;  %v1918_v45 = vmul.f32 0.3275911, %v1916_v44  ;;  %v1944_v37 = vsub.f32 0.0, %v1916_v44  ;;  %v1947_v57 = vmul.f32 %v1945_v36, %v1917_v14 }
 0x6d7   :  { %2517 = vrcp.f32 %v1921_v9  ;;  %v1920_v46 = vadd.f32 1.0, %v1918_v45  ;;  %v1946_v3 = vmul.f32 %v1944_v37, %v1916_v44  ;;  %v1950_v12 = vmul.f32 1.442695, %v1947_v57 }
 0x6d9   :  { %2519 = vrcp.f32 %v1920_v46  ;;  %v1948_v53 = vmul.f32 1.442695, %v1946_v3  ;;  %v2139_v3 = vld [vmem:[%s3025_s12] ss:$0 sm:$0xff] }
 0x6da   :  { %2521 = vpow2.f32 %v1950_v12 }
 0x6db   :  { %2523 = vpow2.f32 %v1948_v53 }
 0x6e4   :  { %v2518_v1 = vpop.eup %2517 }
 0x6e5   :  { %v1927_v15 = vmul.f32 1.0614054, %v2518_v1 }
 0x6e6   :  { %v2520_v23 = vpop.eup %2519 }
 0x6e7   :  { %v1929_v48 = vadd.f32 -1.4531521, %v1927_v15  ;;  %v1926_v0 = vmul.f32 1.0614054, %v2520_v23  ;;  %v2522_v2 = vpop.eup %2521 }
 0x6e8   :  { %v2524_v8 = vpop.eup %2523 }
 0x6e9   :  { %v1931_v40 = vmul.f32 %v2518_v1, %v1929_v48  ;;  %v1928_v49 = vadd.f32 -1.4531521, %v1926_v0 }
 0x6eb   :  { %v1933_v50 = vadd.f32 1.4214138, %v1931_v40  ;;  %v1930_v51 = vmul.f32 %v2520_v23, %v1928_v49 }
 0x6ed   :  { %v1935_v52 = vmul.f32 %v2518_v1, %v1933_v50  ;;  %v1932_v54 = vadd.f32 1.4214138, %v1930_v51 }
 0x6ef   :  { %v1937_v55 = vadd.f32 -0.28449672, %v1935_v52  ;;  %v1934_v56 = vmul.f32 %v2520_v23, %v1932_v54 }
 0x6f1   :  { %v1939_v58 = vmul.f32 %v2518_v1, %v1937_v55  ;;  %v1936_v59 = vadd.f32 -0.28449672, %v1934_v56 }
 0x6f3   :  { %v1941_v60 = vadd.f32 0.2548296, %v1939_v58  ;;  %v1938_v62 = vmul.f32 %v2520_v23, %v1936_v59 }
 0x6f5   :  { %v1943_v63 = vmul.f32 %v2518_v1, %v1941_v60  ;;  %v1940_v4 = vadd.f32 0.2548296, %v1938_v62 }
 0x6f7   :  { %v1953_v6 = vmul.f32 %v2522_v2, %v1943_v63  ;;  %v1942_v7 = vmul.f32 %v2520_v23, %v1940_v4 }
 0x6f9   :  { %v1955_v10 = vsub.f32 1.0, %v1953_v6  ;;  %v1952_v18 = vmul.f32 %v2524_v8, %v1942_v7 }
 0x6fb   :  { %v1957_v19 = vmul.f32 %v1955_v10, %v1915_v13  ;;  %v1954_v20 = vsub.f32 1.0, %v1952_v18 }
 0x6fd   :  { %v1956_v25 = vmul.f32 %v1954_v20, %v1914_v21  ;;  %v1959_v22 = vadd.f32 1.0, %v1957_v19 }
 0x6ff   :  { %v1958_v26 = vadd.f32 1.0, %v1956_v25  ;;  %v1961_v61 = vmul.f32 %v1959_v22, %v1909_v27 }
 0x701   :  { %v1960_v28 = vmul.f32 %v1958_v26, %v1908_v24 }
 0x703   :  { %2462 = vmatprep.mubr.f32.mxu1 %v1960_v28 }
 0x704   :  { %2463 = vmatmul.mubr.f32.vlgmr.msra.gmra.mxu1 %v1961_v61 }
 0x7c4   :  { %v2464_v30 = vpop.f32.mrf.mxu1 }
 0x7c5   :  { %v2057_v31 = vadd.f32 %v2464_v30, %v2138_v29 }
 0x7c6   :  { %v2051_v32 = vpop.f32.mrf.mxu1 }
 0x7c7   :  { %v2052_v33 = vadd.f32 %v2138_v29, %v2051_v32  ;;  %v2061_v5 = vadd.f32 %v2057_v31, %v2987_v17 }
 0x7c9   :  { %2066 = vadd.xlane.f32.xlu1 %v2061_v5  ;;  %v2060_v35 = vadd.f32 %v2052_v33, %v2985_v16 }
 0x7cb   :  { %2064 = vadd.xlane.f32.xlu0 %v2060_v35 }
 0x852   :  { %v2067_v39 = vpop.xlane.xlu1 %2066 }
 0x853   :  { %v2069_v38 = vmul.f32 0.03125, %v2067_v39 }
 0x854   :  { %v2065_v41 = vpop.xlane.xlu0 %2064 }
 0x855   :  { %v2071_v42 = vsub.f32 %v2061_v5, %v2069_v38  ;;  %v2068_v14 = vmul.f32 0.03125, %v2065_v41 }
 0x857   :  { %v2070_v34 = vsub.f32 %v2060_v35, %v2068_v14  ;;  %v2073_v43 = vmul.f32 %v2071_v42, %v2071_v42 }
 0x859   :  { %v2075_v44 = vmul.f32 %v2073_v43, %v2975_v47  ;;  %v2072_v9 = vmul.f32 %v2070_v34, %v2070_v34 }
 0x85b   :  { %2078 = vadd.xlane.f32.xlu1 %v2075_v44  ;;  %v2074_v45 = vmul.f32 %v2072_v9, %v2975_v47  ;;  %v2140_v47 = vld [vmem:[%s3026_s13] ss:$0 sm:$0xff] }
 0x85d   :  { %2076 = vadd.xlane.f32.xlu0 %v2074_v45 }
 0x8e4   :  { %v2079_v46 = vpop.xlane.xlu1 %2078 }
 0x8e5   :  { %v2081_v17 = vmul.f32 0.03125, %v2079_v46 }
 0x8e6   :  { %v2077_v36 = vpop.xlane.xlu0 %2076 }
 0x8e7   :  { %v2083_v37 = vadd.f32 1e-05, %v2081_v17  ;;  %v2080_v16 = vmul.f32 0.03125, %v2077_v36 }
 0x8e9   :  { %2525 = vrsqrt.f32 %v2083_v37  ;;  %v2082_v57 = vadd.f32 1e-05, %v2080_v16 }
 0x8eb   :  { %2527 = vrsqrt.f32 %v2082_v57 }
 0x8f6   :  { %v2526_v1 = vpop.eup %2525 }
 0x8f7   :  { %v2087_v15 = vmul.f32 %v2526_v1, %v2071_v42 }
 0x8f8   :  { %v2528_v12 = vpop.eup %2527 }
 0x8f9   :  { %v2086_v23 = vmul.f32 %v2528_v12, %v2070_v34  ;;  %v2095_v48 = vmul.f32 %v2139_v3, %v2087_v15 }
 0x8fb   :  { %v2094_v53 = vmul.f32 %v2139_v3, %v2086_v23  ;;  %v2103_v0 = vadd.f32 %v2140_v47, %v2095_v48 }
 0x8fd   :  { %v2102_v40 = vadd.f32 %v2140_v47, %v2094_v53  ;;  %2105 = vst [vmem:[#allocation13 + $0x8] sm:$0xff] %v2103_v0 }
 0x8ff   :  { %2104 = vst [vmem:[#allocation13] sm:$0xff] %v2102_v40 }
 0x900   :  { %2660 = shalt.err (!%p2657_p6)
}
 0x901   :  { %2117 = dma.vmem_to_hbm [thread:$0]  %s2112_s22, 256, %s3027_s14, [#allocation4], %s2684_s25, %s2684_s25, %s2685_s26  }
 0x902   :  { %2677 = dma.done.wait [#allocation4], 256  }
 0x903   :  { %2678 = vsyncadd [#allocation4], 4294967040 }
 0x904   :  { %2121 = vsyncpa [#allocation3], 1 }
 0x905   :  { %2122 = vsyncpa [#allocation6], 1 }
 0x906   :  { %2123 = vsyncpa [#allocation9], 1 }
 0x907   :  { %2124 = vsyncpa [#allocation12], 1 }
 0x908   :  { %2125 = vsyncpa [#allocation4], 1 }

</bundles_post_ra>
